<compile_context>
chip_gen: v5e
topology: v5e:2x2
jax: 0.10.0
libtpu: 0.0.40
codegen_flags: <defaults>
</compile_context>

<pallas_src>
import functools

import jax
import jax.numpy as jnp
from jax.experimental import pallas as pl
from jax.experimental.pallas import tpu as pltpu


def _round_up(n: int, m: int) -> int:
    return ((n + m - 1) // m) * m


def dan_kernel(ids_ref, e1_ref, b1_ref, w2_ref, b2_ref, w3_ref, b3_ref,
               out_ref, *, inv_seq_len: float, seq_len: int, vocab_pad: int):
    # ids_ref: [TB, S] int32 token ids for this batch tile.
    tb = ids_ref.shape[0]

    # Fused embedding gather + sequence mean + first Linear:
    #   counts[b, v] = #{s : ids[b, s] == v}
    #   h1 = ReLU((counts @ (E @ W1)) / S + b1)     (exact: mean is linear)
    # Counts are accumulated one sequence position at a time so the live set
    # stays ~2 x [TB, Vp] f32; no [TB, S, Vp] one-hot ever exists.
    vocab_iota = jax.lax.broadcasted_iota(jnp.int32, (1, vocab_pad), 1)  # [1, Vp]
    counts = jnp.zeros((tb, vocab_pad), jnp.float32)
    for s in range(seq_len):                     # fully unrolled; S is small
        col = ids_ref[:, s:s + 1]                # [TB, 1] int32 (static slice)
        counts = counts + (col == vocab_iota).astype(jnp.float32)

    # NOTE: the mean includes padding tokens, matching the PyTorch forward
    # (padding_idx set after init does not alter forward values).
    # TODO(synk): Dropout(p=0.1) is identity at inference; training RNG mask
    # not implemented.
    h1 = jnp.maximum(
        jnp.dot(counts, e1_ref[...], preferred_element_type=jnp.float32)
        * inv_seq_len + b1_ref[...], 0.0)                       # [TB, Dp]
    h2 = jnp.maximum(
        jnp.dot(h1, w2_ref[...], preferred_element_type=jnp.float32)
        + b2_ref[...], 0.0)                                     # [TB, Dp]
    out_ref[...] = (
        jnp.dot(h2, w3_ref[...], preferred_element_type=jnp.float32)
        + b3_ref[...])                                          # [TB, Cp]


def prepare_dan_params(emb_table, w1, b1, w2, b2, w3, b3):
    """One-time (model-init) prep: fuse E@W1 and zero-pad to lane-dense shapes."""
    V, D = emb_table.shape
    C = w3.shape[1]
    Vp, Dp, Cp = _round_up(V, 128), _round_up(D, 128), _round_up(C, 128)
    f32 = jnp.float32

    e1 = jnp.dot(emb_table.astype(f32), w1.astype(f32))   # [V, D], exact fusion
    e1_p = jnp.zeros((Vp, Dp), f32).at[:V, :D].set(e1)
    b1_p = jnp.zeros((1, Dp), f32).at[:, :D].set(b1)
    w2_p = jnp.zeros((Dp, Dp), f32).at[:D, :D].set(w2)
    b2_p = jnp.zeros((1, Dp), f32).at[:, :D].set(b2)
    w3_p = jnp.zeros((Dp, Cp), f32).at[:D, :C].set(w3)
    b3_p = jnp.zeros((1, Cp), f32).at[:, :C].set(b3)

    dims = dict(V=V, D=D, C=C, Vp=Vp, Dp=Dp, Cp=Cp)
    return (e1_p, b1_p, w2_p, b2_p, w3_p, b3_p), dims


def dan_forward(token_ids, padded_params, dims, *, block_b: int = 128):
    """token_ids: [B, S] int; returns logits [B, C] float32."""
    e1_p, b1_p, w2_p, b2_p, w3_p, b3_p = padded_params
    B, S = token_ids.shape
    Vp, Dp, Cp, C = dims["Vp"], dims["Dp"], dims["Cp"], dims["C"]

    Bp = _round_up(B, block_b)
    ids = token_ids.astype(jnp.int32)
    ids_p = ids if Bp == B else jnp.zeros((Bp, S), jnp.int32).at[:B, :].set(ids)

    grid = (pl.cdiv(Bp, block_b),)
    kernel = functools.partial(dan_kernel, inv_seq_len=1.0 / S, seq_len=S,
                               vocab_pad=Vp)

    const = lambda i: (0, 0)  # weights/biases: same block every step (resident)

    flops = 2 * Bp * (Vp * Dp + Dp * Dp + Dp * Cp)
    bytes_accessed = 4 * (Bp * S + Vp * Dp + Dp * Dp + Dp * Cp
                          + 2 * Dp + Cp + Bp * Cp)

    out_padded = pl.pallas_call(
        kernel,
        out_shape=jax.ShapeDtypeStruct((Bp, Cp), jnp.float32),
        grid=grid,
        in_specs=[
            pl.BlockSpec((block_b, S), lambda i: (i, 0)),   # token ids (batch-tiled)
            pl.BlockSpec((Vp, Dp), const),                  # E @ W1 (fused)
            pl.BlockSpec((1, Dp), const),                   # b1
            pl.BlockSpec((Dp, Dp), const),                  # w2
            pl.BlockSpec((1, Dp), const),                   # b2
            pl.BlockSpec((Dp, Cp), const),                  # w3
            pl.BlockSpec((1, Cp), const),                   # b3
        ],
        out_specs=pl.BlockSpec((block_b, Cp), lambda i: (i, 0)),
        compiler_params=pltpu.CompilerParams(
            dimension_semantics=("parallel",),
            vmem_limit_bytes=48 * 1024 * 1024,
        ),
        cost_estimate=pl.CostEstimate(
            flops=flops, transcendentals=0, bytes_accessed=bytes_accessed),
    )(ids_p, e1_p, b1_p, w2_p, b2_p, w3_p, b3_p)

    return out_padded[:B, :C]


if __name__ == "__main__":
    # Small, deterministic configuration.  B=256 with block_b=128 gives a
    # 2-step parallel grid (both v7x TensorCores get work).
    B = 256         # batch
    S = 8           # sequence length
    V = 64          # vocab size
    D = 32          # embedding dim == hidden layer size
    C = 3           # output classes
    block_b = 128

    key = jax.random.PRNGKey(0)
    k_emb, k_ids, kw1, kb1, kw2, kb2, kw3, kb3 = jax.random.split(key, 8)

    emb_table = jax.random.normal(k_emb, (V, D), dtype=jnp.float32) * 0.1
    token_ids = jax.random.randint(k_ids, (B, S), 0, V, dtype=jnp.int32)

    # Linear params stored as [in, out]; biases as [1, out].
    w1 = jax.random.normal(kw1, (D, D), dtype=jnp.float32) * 0.1
    b1 = jax.random.normal(kb1, (1, D), dtype=jnp.float32) * 0.1
    w2 = jax.random.normal(kw2, (D, D), dtype=jnp.float32) * 0.1
    b2 = jax.random.normal(kb2, (1, D), dtype=jnp.float32) * 0.1
    w3 = jax.random.normal(kw3, (D, C), dtype=jnp.float32) * 0.1
    b3 = jax.random.normal(kb3, (1, C), dtype=jnp.float32) * 0.1

    padded_params, dims = prepare_dan_params(emb_table, w1, b1, w2, b2, w3, b3)
    logits = dan_forward(token_ids, padded_params, dims, block_b=block_b)
    jax.block_until_ready(logits)

    # Pure-JAX reference (gather + mean + MLP), matching the PyTorch forward.
    emb = jnp.take(emb_table, token_ids, axis=0)
    avg = jnp.mean(emb, axis=1)
    h1 = jnp.maximum(avg @ w1 + b1, 0.0)
    h2 = jnp.maximum(h1 @ w2 + b2, 0.0)
    ref = h2 @ w3 + b3

    assert logits.shape == (B, C)
    assert jnp.allclose(logits, ref, atol=1e-4, rtol=1e-4), \
        float(jnp.max(jnp.abs(logits - ref)))

    print("KERNEL_OK")
</pallas_src>

<mosaic_0001>
module attributes {stable_mosaic.version = 11 : i64} {
  func.func @dan_kernel(%arg0: i32, %arg1: memref<128x8xi32, #tpu.memory_space<vmem>>, %arg2: memref<128x128xf32, #tpu.memory_space<vmem>>, %arg3: memref<1x128xf32, #tpu.memory_space<vmem>>, %arg4: memref<128x128xf32, #tpu.memory_space<vmem>>, %arg5: memref<1x128xf32, #tpu.memory_space<vmem>>, %arg6: memref<128x128xf32, #tpu.memory_space<vmem>>, %arg7: memref<1x128xf32, #tpu.memory_space<vmem>>, %arg8: memref<128x128xf32, #tpu.memory_space<vmem>>) attributes {dimension_semantics = [#tpu.dimension_semantics<parallel>], iteration_bounds = array<i64: 2>, scalar_prefetch = 0 : i64, scratch_operands = 0 : i64, tpu.core_type = #tpu.core_type<tc>, window_params = [{transform_indices = @transform_0, window_bounds = array<i64: 128, 8>}, {pipeline_mode = #tpu.pipeline_mode<synchronous>, transform_indices = @transform_1, window_bounds = array<i64: 128, 128>}, {pipeline_mode = #tpu.pipeline_mode<synchronous>, transform_indices = @transform_2, window_bounds = array<i64: 1, 128>}, {pipeline_mode = #tpu.pipeline_mode<synchronous>, transform_indices = @transform_3, window_bounds = array<i64: 128, 128>}, {pipeline_mode = #tpu.pipeline_mode<synchronous>, transform_indices = @transform_4, window_bounds = array<i64: 1, 128>}, {pipeline_mode = #tpu.pipeline_mode<synchronous>, transform_indices = @transform_5, window_bounds = array<i64: 128, 128>}, {pipeline_mode = #tpu.pipeline_mode<synchronous>, transform_indices = @transform_6, window_bounds = array<i64: 1, 128>}, {transform_indices = @transform_7, window_bounds = array<i64: 128, 128>}]} {
    %0 = tpu.iota {dimensions = array<i32: 1>} : vector<1x128xi32>
    %cst = arith.constant 0.000000e+00 : f32
    %1 = vector.broadcast %cst : f32 to vector<128x128xf32>
    %c0 = arith.constant 0 : index
    %c0_0 = arith.constant 0 : index
    %2 = vector.load %arg1[%c0, %c0_0] : memref<128x8xi32, #tpu.memory_space<vmem>>, vector<128x1xi32>
    %3 = vector.broadcast %2 : vector<128x1xi32> to vector<128x128xi32>
    %4 = vector.broadcast %0 : vector<1x128xi32> to vector<128x128xi32>
    %5 = arith.cmpi eq, %3, %4 : vector<128x128xi32>
    %6 = arith.extui %5 : vector<128x128xi1> to vector<128x128xi32>
    %7 = arith.sitofp %6 : vector<128x128xi32> to vector<128x128xf32>
    %8 = arith.addf %1, %7 : vector<128x128xf32>
    %c0_1 = arith.constant 0 : index
    %c1 = arith.constant 1 : index
    %9 = vector.load %arg1[%c0_1, %c1] : memref<128x8xi32, #tpu.memory_space<vmem>>, vector<128x1xi32>
    %10 = vector.broadcast %9 : vector<128x1xi32> to vector<128x128xi32>
    %11 = vector.broadcast %0 : vector<1x128xi32> to vector<128x128xi32>
    %12 = arith.cmpi eq, %10, %11 : vector<128x128xi32>
    %13 = arith.extui %12 : vector<128x128xi1> to vector<128x128xi32>
    %14 = arith.sitofp %13 : vector<128x128xi32> to vector<128x128xf32>
    %15 = arith.addf %8, %14 : vector<128x128xf32>
    %c0_2 = arith.constant 0 : index
    %c2 = arith.constant 2 : index
    %16 = vector.load %arg1[%c0_2, %c2] : memref<128x8xi32, #tpu.memory_space<vmem>>, vector<128x1xi32>
    %17 = vector.broadcast %16 : vector<128x1xi32> to vector<128x128xi32>
    %18 = vector.broadcast %0 : vector<1x128xi32> to vector<128x128xi32>
    %19 = arith.cmpi eq, %17, %18 : vector<128x128xi32>
    %20 = arith.extui %19 : vector<128x128xi1> to vector<128x128xi32>
    %21 = arith.sitofp %20 : vector<128x128xi32> to vector<128x128xf32>
    %22 = arith.addf %15, %21 : vector<128x128xf32>
    %c0_3 = arith.constant 0 : index
    %c3 = arith.constant 3 : index
    %23 = vector.load %arg1[%c0_3, %c3] : memref<128x8xi32, #tpu.memory_space<vmem>>, vector<128x1xi32>
    %24 = vector.broadcast %23 : vector<128x1xi32> to vector<128x128xi32>
    %25 = vector.broadcast %0 : vector<1x128xi32> to vector<128x128xi32>
    %26 = arith.cmpi eq, %24, %25 : vector<128x128xi32>
    %27 = arith.extui %26 : vector<128x128xi1> to vector<128x128xi32>
    %28 = arith.sitofp %27 : vector<128x128xi32> to vector<128x128xf32>
    %29 = arith.addf %22, %28 : vector<128x128xf32>
    %c0_4 = arith.constant 0 : index
    %c4 = arith.constant 4 : index
    %30 = vector.load %arg1[%c0_4, %c4] : memref<128x8xi32, #tpu.memory_space<vmem>>, vector<128x1xi32>
    %31 = vector.broadcast %30 : vector<128x1xi32> to vector<128x128xi32>
    %32 = vector.broadcast %0 : vector<1x128xi32> to vector<128x128xi32>
    %33 = arith.cmpi eq, %31, %32 : vector<128x128xi32>
    %34 = arith.extui %33 : vector<128x128xi1> to vector<128x128xi32>
    %35 = arith.sitofp %34 : vector<128x128xi32> to vector<128x128xf32>
    %36 = arith.addf %29, %35 : vector<128x128xf32>
    %c0_5 = arith.constant 0 : index
    %c5 = arith.constant 5 : index
    %37 = vector.load %arg1[%c0_5, %c5] : memref<128x8xi32, #tpu.memory_space<vmem>>, vector<128x1xi32>
    %38 = vector.broadcast %37 : vector<128x1xi32> to vector<128x128xi32>
    %39 = vector.broadcast %0 : vector<1x128xi32> to vector<128x128xi32>
    %40 = arith.cmpi eq, %38, %39 : vector<128x128xi32>
    %41 = arith.extui %40 : vector<128x128xi1> to vector<128x128xi32>
    %42 = arith.sitofp %41 : vector<128x128xi32> to vector<128x128xf32>
    %43 = arith.addf %36, %42 : vector<128x128xf32>
    %c0_6 = arith.constant 0 : index
    %c6 = arith.constant 6 : index
    %44 = vector.load %arg1[%c0_6, %c6] : memref<128x8xi32, #tpu.memory_space<vmem>>, vector<128x1xi32>
    %45 = vector.broadcast %44 : vector<128x1xi32> to vector<128x128xi32>
    %46 = vector.broadcast %0 : vector<1x128xi32> to vector<128x128xi32>
    %47 = arith.cmpi eq, %45, %46 : vector<128x128xi32>
    %48 = arith.extui %47 : vector<128x128xi1> to vector<128x128xi32>
    %49 = arith.sitofp %48 : vector<128x128xi32> to vector<128x128xf32>
    %50 = arith.addf %43, %49 : vector<128x128xf32>
    %c0_7 = arith.constant 0 : index
    %c7 = arith.constant 7 : index
    %51 = vector.load %arg1[%c0_7, %c7] : memref<128x8xi32, #tpu.memory_space<vmem>>, vector<128x1xi32>
    %52 = vector.broadcast %51 : vector<128x1xi32> to vector<128x128xi32>
    %53 = vector.broadcast %0 : vector<1x128xi32> to vector<128x128xi32>
    %54 = arith.cmpi eq, %52, %53 : vector<128x128xi32>
    %55 = arith.extui %54 : vector<128x128xi1> to vector<128x128xi32>
    %56 = arith.sitofp %55 : vector<128x128xi32> to vector<128x128xf32>
    %57 = arith.addf %50, %56 : vector<128x128xf32>
    %c0_8 = arith.constant 0 : index
    %c0_9 = arith.constant 0 : index
    %58 = vector.load %arg2[%c0_8, %c0_9] : memref<128x128xf32, #tpu.memory_space<vmem>>, vector<128x128xf32>
    %cst_10 = arith.constant dense<0.000000e+00> : vector<128x128xf32>
    %59 = tpu.matmul %57, %58, %cst_10 {dimension_numbers = #tpu.dot_dimension_numbers<[1], [0], [0], [1], [0, 0, 1, 1], [], []>} : vector<128x128xf32>, vector<128x128xf32>, vector<128x128xf32> -> vector<128x128xf32>
    %cst_11 = arith.constant 1.250000e-01 : f32
    %60 = vector.broadcast %cst_11 : f32 to vector<128x128xf32>
    %61 = arith.mulf %59, %60 : vector<128x128xf32>
    %c0_12 = arith.constant 0 : index
    %c0_13 = arith.constant 0 : index
    %62 = vector.load %arg3[%c0_12, %c0_13] : memref<1x128xf32, #tpu.memory_space<vmem>>, vector<1x128xf32>
    %63 = vector.broadcast %62 : vector<1x128xf32> to vector<128x128xf32>
    %64 = arith.addf %61, %63 : vector<128x128xf32>
    %cst_14 = arith.constant 0.000000e+00 : f32
    %65 = vector.broadcast %cst_14 : f32 to vector<128x128xf32>
    %66 = arith.maximumf %64, %65 : vector<128x128xf32>
    %c0_15 = arith.constant 0 : index
    %c0_16 = arith.constant 0 : index
    %67 = vector.load %arg4[%c0_15, %c0_16] : memref<128x128xf32, #tpu.memory_space<vmem>>, vector<128x128xf32>
    %cst_17 = arith.constant dense<0.000000e+00> : vector<128x128xf32>
    %68 = tpu.matmul %66, %67, %cst_17 {dimension_numbers = #tpu.dot_dimension_numbers<[1], [0], [0], [1], [0, 0, 1, 1], [], []>} : vector<128x128xf32>, vector<128x128xf32>, vector<128x128xf32> -> vector<128x128xf32>
    %c0_18 = arith.constant 0 : index
    %c0_19 = arith.constant 0 : index
    %69 = vector.load %arg5[%c0_18, %c0_19] : memref<1x128xf32, #tpu.memory_space<vmem>>, vector<1x128xf32>
    %70 = vector.broadcast %69 : vector<1x128xf32> to vector<128x128xf32>
    %71 = arith.addf %68, %70 : vector<128x128xf32>
    %cst_20 = arith.constant 0.000000e+00 : f32
    %72 = vector.broadcast %cst_20 : f32 to vector<128x128xf32>
    %73 = arith.maximumf %71, %72 : vector<128x128xf32>
    %c0_21 = arith.constant 0 : index
    %c0_22 = arith.constant 0 : index
    %74 = vector.load %arg6[%c0_21, %c0_22] : memref<128x128xf32, #tpu.memory_space<vmem>>, vector<128x128xf32>
    %cst_23 = arith.constant dense<0.000000e+00> : vector<128x128xf32>
    %75 = tpu.matmul %73, %74, %cst_23 {dimension_numbers = #tpu.dot_dimension_numbers<[1], [0], [0], [1], [0, 0, 1, 1], [], []>} : vector<128x128xf32>, vector<128x128xf32>, vector<128x128xf32> -> vector<128x128xf32>
    %c0_24 = arith.constant 0 : index
    %c0_25 = arith.constant 0 : index
    %76 = vector.load %arg7[%c0_24, %c0_25] : memref<1x128xf32, #tpu.memory_space<vmem>>, vector<1x128xf32>
    %77 = vector.broadcast %76 : vector<1x128xf32> to vector<128x128xf32>
    %78 = arith.addf %75, %77 : vector<128x128xf32>
    %c0_26 = arith.constant 0 : index
    %c0_27 = arith.constant 0 : index
    %79 = vector.load %arg8[%c0_26, %c0_27] : memref<128x128xf32, #tpu.memory_space<vmem>>, vector<128x128xf32>
    tpu.vector_store %arg8[%c0_26, %c0_27], %78 {strides = array<i32>} : memref<128x128xf32, #tpu.memory_space<vmem>>, vector<128x128xf32>,
    return
  }
  func.func @transform_0(%arg0: i32) -> (i32, i32) {
    %c0_i32 = arith.constant 0 : i32
    %c0_i32_0 = arith.constant 0 : i32
    return %arg0, %c0_i32 : i32, i32
  }
  func.func @transform_1(%arg0: i32) -> (i32, i32) {
    %c0_i32 = arith.constant 0 : i32
    %c0_i32_0 = arith.constant 0 : i32
    %c0_i32_1 = arith.constant 0 : i32
    return %c0_i32, %c0_i32_0 : i32, i32
  }
  func.func @transform_2(%arg0: i32) -> (i32, i32) {
    %c0_i32 = arith.constant 0 : i32
    %c0_i32_0 = arith.constant 0 : i32
    %c0_i32_1 = arith.constant 0 : i32
    return %c0_i32, %c0_i32_0 : i32, i32
  }
  func.func @transform_3(%arg0: i32) -> (i32, i32) {
    %c0_i32 = arith.constant 0 : i32
    %c0_i32_0 = arith.constant 0 : i32
    %c0_i32_1 = arith.constant 0 : i32
    return %c0_i32, %c0_i32_0 : i32, i32
  }
  func.func @transform_4(%arg0: i32) -> (i32, i32) {
    %c0_i32 = arith.constant 0 : i32
    %c0_i32_0 = arith.constant 0 : i32
    %c0_i32_1 = arith.constant 0 : i32
    return %c0_i32, %c0_i32_0 : i32, i32
  }
  func.func @transform_5(%arg0: i32) -> (i32, i32) {
    %c0_i32 = arith.constant 0 : i32
    %c0_i32_0 = arith.constant 0 : i32
    %c0_i32_1 = arith.constant 0 : i32
    return %c0_i32, %c0_i32_0 : i32, i32
  }
  func.func @transform_6(%arg0: i32) -> (i32, i32) {
    %c0_i32 = arith.constant 0 : i32
    %c0_i32_0 = arith.constant 0 : i32
    %c0_i32_1 = arith.constant 0 : i32
    return %c0_i32, %c0_i32_0 : i32, i32
  }
  func.func @transform_7(%arg0: i32) -> (i32, i32) {
    %c0_i32 = arith.constant 0 : i32
    %c0_i32_0 = arith.constant 0 : i32
    return %arg0, %c0_i32 : i32, i32
  }
}

</mosaic_0001>

<bundles_post_ra>
// kernel: tpu_custom_call.1
= control target key start
LH: loop header
LB: loop body
LE: loop exit
PB: predicated region body
PF: predicated region fallthrough
CT: control target
= control target key end

     0   :  { %12 = vsyncpa [#allocation3], 0  ;;  %s3139_s0 = inlined_call_operand.vmem [shape: s32[256,8], index: 0, kind: input, shape index: {}]   ;;  %s3140_s1 = inlined_call_operand.vmem [shape: f32[128,128], index: 1, kind: input, shape index: {}]   ;;  %s3141_s2 = inlined_call_operand.vmem [shape: f32[1,128], index: 2, kind: input, shape index: {}]   ;;  %s3142_s3 = inlined_call_operand.vmem [shape: f32[128,128], index: 3, kind: input, shape index: {}]   ;;  %s3143_s4 = inlined_call_operand.vmem [shape: f32[1,128], index: 4, kind: input, shape index: {}]   ;;  %s3144_s5 = inlined_call_operand.hbm [shape: f32[128,128], index: 5, kind: input, shape index: {}]   ;;  %s3145_s6 = inlined_call_operand.vmem [shape: f32[1,128], index: 6, kind: input, shape index: {}]   ;;  %s3146_s7 = inlined_call_operand.hbm [shape: f32[256,128], index: 7, kind: output, shape index: {}]  }
   0x1   :  { %13 = vsyncpa [#allocation4], 0 }
   0x2   :  { %15 = vsyncpa [#allocation4 + $0x1], 0  ;;  %s2136_s24 = smov 0   ;;  %s2138_s25 = smov 0  }
   0x3   :  { %s2140_s26 = smov 0   ;;  %s2142_s27 = smov 0  }
   0x4 LB: > { %s2157_s28 = sadd.s32 4294967295, %s2080_s27   ;;  %s1636_s29 = sadd.s32 4294967294, %s2080_s27   ;;  %s2080_s27 = sphi %s2142_s27, %s3152_s27   ;;  %s2076_s26 = sphi %s2140_s26, %s3151_s26   ;;  %s2072_s25 = sphi %s2138_s25, %s3150_s25   ;;  %s2068_s24 = sphi %s2136_s24, %s3149_s24  }
   0x5   : > { %s2161_s30 = sadd.s32 1, %s2080_s27   ;;  %s180_s8 = sadd.s32 1, %s2076_s26 }
   0x6   : > { %s177_s9 = ssub.s32 %s2080_s27, %s2161_s30  ;;  %p190_p0 = scmp.ne.s32.totalorder %s2076_s26, %s2072_s25 }
   0x7   : > { %p178_p1 = scmp.eq.s32.totalorder %s177_s9, 0  ;;  %p191_p2 = scmp.eq.s32.totalorder %s2157_s28, 1 }
   0x8   : > { %p196_p3 = scmp.ne.s32.totalorder %s2072_s25, %s2068_s24  ;;  %p197_p4 = scmp.eq.s32.totalorder %s1636_s29, 1 }
   0x9   : > { %s2172_s10 = scalar_select %p178_p1, %s2076_s26, %s180_s8  }
   0xa   : > { %p2174_p5 = por %p191_p2, %p190_p0  ;;  %p2178_p6 = por %p197_p4, %p196_p3 }
   0xb   : > { %p1637_p7 = scmp.ge.s32.totalorder %s2080_s27, 1  ;;  %p204_p8 = scmp.lt.s32.totalorder %s2080_s27, 3 }
   0xc   : > { %p1841_p9 = scmp.eq.s32.totalorder %s2157_s28, 0  ;;  %s227_s15 = sshll.u32 %s3144_s5, 4  ;;  %s228_s15 = int_to_ptr.hbm [resolvable:$true] %s227_s15 }
   0xd   : > { %p205_p10 = pnand %p1637_p7, %p204_p8  ;;  %s2082_s16 = smov [#allocation2]  }
   0xe   : > { %s229_s17 = sshll.u32 %s2082_s16, 4  ;;  %s2083_s18 = smov 128   ;;  %s230_s17 = int_to_ptr.vmem [resolvable:$true] %s229_s17 }
   0xf   : > { %p1833_p11 = pneg %p205_p10  ;;  %s2084_s19 = smov 8  }
  0x10   : > { %257 = sbr.rel (%p205_p10) target bundleno = 966 (0x3c6), region = 48 }
  0x11   : > { %p1834_p12 = pnand %p1841_p9, %p1833_p11 }
  0x13   : > { %1836 = dma.hbm_to_vmem [thread:$0]  (!%p1834_p12), %s228_s15, 2048, %s230_s17, [#allocation3], %s2083_s18, %s2083_s18, %s2084_s19  }
  0x15   : > { %2059 = dma.done.wait (%p1841_p9), [#allocation3], 2048  }
  0x16   : > { %2061 = vsyncadd (%p1841_p9), [#allocation3], 4294965248  ;;  %s1643_s20 = sshll.u32 %s2157_s28, 4  ;;  %v2085_v0 = vmov 0   ;;  %v2086_v17 = vmov 1   ;;  %v2087_v18 = vmov 2   ;;  %v297_v28 = vlaneseq }
  0x17   : > { %1892 = vset.pattern.permute.xlu2 %v2085_v0  ;;  %1891 = vset.pattern.permute.xlu1 %v2085_v0  ;;  %p291_p13 = scmp.lt.s32.totalorder %s1643_s20, 31  ;;  %v2088_v22 = vmov 3   ;;  %v2089_v23 = vmov 5   ;;  %v2090_v27 = vmov 6   ;;  %v2091_v32 = vmov 7   ;;  %s1778_s17 = sshll.u32 %s2157_s28, 7 }
  0x18   : > { %1890 = vset.pattern.permute.xlu0 %v2085_v0  ;;  %v2317_v33 = vand.u32 127, %v297_v28  ;;  %v2092_v35 = vmov 0.0   ;;  %v2093_v47 = vmov 4   ;;  %s2034_s14 = scalar_lea.hbm %s3146_s7, 256 }
  0x19   : > { %s3154_s20 = smov (!%p291_p13, %s1643_s20), 31 }
  0x1a   : > { %s1644_s21 = sshll.u32 %s3154_s20, 3  ;;  %s1558_s20 = scalar_lea.hbm %s3146_s7, %s1778_s17 }
  0x1b   : > { %s2198_s29 = scalar_lea.vmem %s3139_s0, %s1644_s21  ;;  %s1561_s22 = sshll.u32 %s1558_s20, 4  ;;  %s1562_s22 = int_to_ptr.hbm [resolvable:$true] %s1561_s22 }
  0x1c   : > { %v2201_v1 = vld [vmem:[%s2198_s29 + $0x20] sm:$0xff]  ;;  %v2204_v2 = vld [vmem:[%s2198_s29 + $0x10] sm:$0xff]  ;;  %v2213_v4 = vld [vmem:[%s2198_s29 + $0x28] sm:$0xff]  ;;  %s2028_s8 = sshra.s32 %s1562_s22, 4  ;;  %s2029_s8 = int_to_ptr.hbm [resolvable:$true] %s2028_s8 }
  0x1d   : > { %v2207_v3 = vld [vmem:[%s2198_s29] sm:$0xff]  ;;  %328 = vperm.xlu2 %1892, %v2201_v1   ;;  %322 = vperm.xlu1 %1891, %v2204_v2   ;;  %v2216_v5 = vld [vmem:[%s2198_s29 + $0x18] sm:$0xff]  ;;  %v2219_v6 = vld [vmem:[%s2198_s29 + $0x8] sm:$0xff]  ;;  %s2030_s9 = scalar_lea.hbm %s2029_s8, 128  ;;  %p2035_p3 = scmp.lt.s32.totalorder %s2029_s8, %s3146_s7 }
  0x1e   : > { %316 = vperm.xlu0 %1890, %v2207_v3   ;;  %v2225_v7 = vld [vmem:[%s2198_s29 + $0x40] sm:$0xff]  ;;  %v2228_v8 = vld [vmem:[%s2198_s29 + $0x38] sm:$0xff]  ;;  %v2231_v9 = vld [vmem:[%s2198_s29 + $0x30] sm:$0xff]  ;;  %p2031_p0 = scmp.ne.s32.totalorder %s2029_s8, %s2030_s9  ;;  %p2036_p4 = scmp.lt.s32.totalorder %s2034_s14, %s2030_s9 }
  0x1f   : > { %v2237_v10 = vld [vmem:[%s2198_s29 + $0x58] sm:$0xff]  ;;  %v2240_v11 = vld [vmem:[%s2198_s29 + $0x50] sm:$0xff]  ;;  %v2243_v12 = vld [vmem:[%s2198_s29 + $0x48] sm:$0xff] }
  0x20   : > { %v2249_v13 = vld [vmem:[%s2198_s29 + $0x70] sm:$0xff]  ;;  %v2252_v14 = vld [vmem:[%s2198_s29 + $0x68] sm:$0xff]  ;;  %v2255_v15 = vld [vmem:[%s2198_s29 + $0x60] sm:$0xff]  ;;  %p2032_p1 = pnand %p2031_p0, %p2174_p5  ;;  %p2037_p7 = por %p2036_p4, %p2035_p3 }
  0x21   : > { %v2261_v16 = vld [vmem:[%s2198_s29 + $0x78] sm:$0xff] }
  0x22   : > { %p2033_p2 = pneg %p2032_p1 }
  0x24   : > { %p2038_p8 = pnand %p2037_p7, %p2033_p2 }
  0x25   : > { %331 = vperm.xlu2 %1892, %v2213_v4   ;;  %325 = vperm.xlu1 %1891, %v2216_v5  }
  0x26   : > { %319 = vperm.xlu0 %1890, %v2219_v6  }
  0x2d   : > { %340 = vperm.xlu2 %1892, %v2225_v7   ;;  %337 = vperm.xlu1 %1891, %v2228_v8  }
  0x2e   : > { %334 = vperm.xlu0 %1890, %v2231_v9  }
  0x35   : > { %349 = vperm.xlu2 %1892, %v2237_v10   ;;  %346 = vperm.xlu1 %1891, %v2240_v11  }
  0x36   : > { %343 = vperm.xlu0 %1890, %v2243_v12  }
  0x3d   : > { %358 = vperm.xlu2 %1892, %v2249_v13   ;;  %355 = vperm.xlu1 %1891, %v2252_v14  }
  0x3e   : > { %352 = vperm.xlu0 %1890, %v2255_v15  }
  0x45   : > { %1894 = vset.pattern.permute.xlu2 %v2086_v17  ;;  %1893 = vset.pattern.permute.xlu1 %v2086_v17 }
  0x46   : > { %361 = vperm.xlu0 %1890, %v2261_v16   ;;  %431 = vperm.xlu2 %1894, %v2219_v6  }
  0x47   : > { %428 = vperm.xlu1 %1893, %v2207_v3  }
  0x4e   : > { %1895 = vset.pattern.permute.xlu0 %v2086_v17  ;;  %440 = vperm.xlu2 %1894, %v2201_v1  }
  0x4f   : > { %437 = vperm.xlu1 %1893, %v2216_v5   ;;  %434 = vperm.xlu0 %1895, %v2204_v2  }
  0x56   : > { %446 = vperm.xlu2 %1894, %v2231_v9  }
  0x57   : > { %443 = vperm.xlu1 %1893, %v2213_v4   ;;  %449 = vperm.xlu0 %1895, %v2228_v8  }
  0x5e   : > { %455 = vperm.xlu2 %1894, %v2243_v12  }
  0x5f   : > { %452 = vperm.xlu1 %1893, %v2225_v7   ;;  %458 = vperm.xlu0 %1895, %v2240_v11  }
  0x66   : > { %464 = vperm.xlu2 %1894, %v2255_v15  }
  0x67   : > { %461 = vperm.xlu1 %1893, %v2237_v10   ;;  %467 = vperm.xlu0 %1895, %v2252_v14  }
  0x6e   : > { %473 = vperm.xlu2 %1894, %v2261_v16  }
  0x6f   : > { %470 = vperm.xlu1 %1893, %v2249_v13   ;;  %1896 = vset.pattern.permute.xlu0 %v2087_v18 }
  0x70   : > { %540 = vperm.xlu0 %1896, %v2207_v3  }
  0x76   : > { %1898 = vset.pattern.permute.xlu2 %v2087_v18 }
  0x77   : > { %1897 = vset.pattern.permute.xlu1 %v2087_v18  ;;  %v329_v19 = vpop.permute.xlu2 %328  ;;  %546 = vperm.xlu2 %1898, %v2204_v2  }
  0x78   : > { %543 = vperm.xlu1 %1897, %v2219_v6   ;;  %555 = vperm.xlu0 %1896, %v2213_v4   ;;  %vm367_vm2 = vcmp.eq.s32.totalorder %v329_v19, %v2317_v33 }
  0x79   : > { %v1649_v44 = vsel %vm367_vm2, 1.0, %v2092_v35 }
  0x7f   : > { %v2287_v20 = vpop.permute.xlu2 %331  ;;  %552 = vperm.xlu2 %1898, %v2201_v1  }
  0x80   : > { %549 = vperm.xlu1 %1897, %v2216_v5   ;;  %579 = vperm.xlu0 %1896, %v2252_v14  }
  0x87   : > { %v2292_v21 = vpop.permute.xlu2 %340  ;;  %1899 = vset.pattern.permute.xlu2 %v2088_v22 }
  0x88   : > { %558 = vperm.xlu1 %1897, %v2231_v9   ;;  %1930 = vset.pattern.permute.xlu0 %v2089_v23 }
  0x89   : > { %652 = vperm.xlu2 %1899, %v2207_v3   ;;  %885 = vperm.xlu0 %1930, %v2216_v5  }
  0x8f   : > { %v2299_v24 = vpop.permute.xlu2 %349  ;;  %v2301_v25 = vpop.permute.xlu1 %322 }
  0x90   : > { %1900 = vset.pattern.permute.xlu1 %v2089_v23  ;;  %v2304_v26 = vpop.permute.xlu0 %316  ;;  %vm365_vm11 = vcmp.eq.s32.totalorder %v2301_v25, %v2317_v33 }
  0x91   : > { %1901 = vset.pattern.permute.xlu2 %v2090_v27  ;;  %876 = vperm.xlu1 %1900, %v2207_v3   ;;  %vm363_vm7 = vcmp.eq.s32.totalorder %v2304_v26, %v2317_v33  ;;  %v1647_v26 = vsel %vm365_vm11, 1.0, %v2092_v35  ;;  %vm374_vm11 = vcmp.eq.s32.totalorder %v2299_v24, %v2317_v33 }
  0x92   : > { %888 = vperm.xlu0 %1930, %v2201_v1   ;;  %988 = vperm.xlu2 %1901, %v2207_v3   ;;  %v1645_v57 = vsel %vm363_vm7, 1.0, %v2092_v35 }
  0x97   : > { %v2310_v29 = vpop.permute.xlu2 %358  ;;  %v2312_v30 = vpop.permute.xlu1 %325 }
  0x98   : > { %v320_v31 = vpop.permute.xlu0 %319  ;;  %vm366_vm12 = vcmp.eq.s32.totalorder %v2312_v30, %v2317_v33 }
  0x99   : > { %1902 = vset.pattern.permute.xlu1 %v2088_v22  ;;  %vm364_vm0 = vcmp.eq.s32.totalorder %v320_v31, %v2317_v33 }
  0x9a   : > { %915 = vperm.xlu0 %1930, %v2252_v14   ;;  %1903 = vset.pattern.permute.xlu2 %v2091_v32  ;;  %v1646_v36 = vsel %vm364_vm0, 1.0, %v2092_v35 }
  0x9b   : > { %655 = vperm.xlu1 %1902, %v2219_v6   ;;  %1100 = vperm.xlu2 %1903, %v2207_v3  }
  0x9f   : > { %v2322_v34 = vpop.permute.xlu1 %337 }
  0xa0   : > { %v432_v37 = vpop.permute.xlu2 %431  ;;  %v335_v38 = vpop.permute.xlu0 %334  ;;  %vm370_vm2 = vcmp.eq.s32.totalorder %v2322_v34, %v2317_v33 }
  0xa1   : > { %vm476_vm1 = vcmp.eq.s32.totalorder %v432_v37, %v2317_v33  ;;  %vm369_vm4 = vcmp.eq.s32.totalorder %v335_v38, %v2317_v33  ;;  %v1652_v34 = vsel %vm370_vm2, 1.0, %v2092_v35 }
  0xa2   : > { %v1662_v39 = vsel %vm476_vm1, 1.0, %v2092_v35  ;;  %1939 = vset.pattern.permute.xlu0 %v2088_v22  ;;  %v1651_v49 = vsel %vm369_vm4, 1.0, %v2092_v35  ;;  %vm368_vm1 = vcmp.eq.s32.totalorder %v2287_v20, %v2317_v33 }
  0xa3   : > { %v2328_v40 = vadd.f32 %v1662_v39, %v1646_v36  ;;  %1904 = vset.pattern.permute.xlu1 %v2089_v23  ;;  %658 = vperm.xlu0 %1939, %v2204_v2   ;;  %v1650_v20 = vsel %vm368_vm1, 1.0, %v2092_v35 }
  0xa4   : > { %1905 = vset.pattern.permute.xlu2 %v2090_v27  ;;  %879 = vperm.xlu1 %1904, %v2219_v6  }
  0xa5   : > { %991 = vperm.xlu2 %1905, %v2219_v6  }
  0xa7   : > { %v2336_v41 = vpop.permute.xlu1 %346 }
  0xa8   : > { %v441_v42 = vpop.permute.xlu2 %440  ;;  %v344_v43 = vpop.permute.xlu0 %343  ;;  %vm373_vm7 = vcmp.eq.s32.totalorder %v2336_v41, %v2317_v33 }
  0xa9   : > { %vm479_vm3 = vcmp.eq.s32.totalorder %v441_v42, %v2317_v33  ;;  %vm372_vm6 = vcmp.eq.s32.totalorder %v344_v43, %v2317_v33 }
  0xaa   : > { %v1665_v45 = vsel %vm479_vm3, 1.0, %v2092_v35  ;;  %v1654_v54 = vsel %vm372_vm6, 1.0, %v2092_v35  ;;  %vm371_vm6 = vcmp.eq.s32.totalorder %v2292_v21, %v2317_v33 }
  0xab   : > { %v2341_v46 = vadd.f32 %v1665_v45, %v1649_v44  ;;  %661 = vperm.xlu0 %1939, %v2216_v5  }
  0xac   : > { %1906 = vset.pattern.permute.xlu1 %v2091_v32 }
  0xad   : > { %1907 = vset.pattern.permute.xlu2 %v2093_v47  ;;  %1103 = vperm.xlu1 %1906, %v2219_v6  }
  0xae   : > { %770 = vperm.xlu2 %1907, %v2204_v2  }
  0xaf   : > { %v2349_v48 = vpop.permute.xlu1 %355 }
  0xb0   : > { %v447_v50 = vpop.permute.xlu2 %446  ;;  %v353_v51 = vpop.permute.xlu0 %352 }
  0xb1   : > { %vm481_vm5 = vcmp.eq.s32.totalorder %v447_v50, %v2317_v33  ;;  %vm375_vm10 = vcmp.eq.s32.totalorder %v353_v51, %v2317_v33 }
  0xb2   : > { %v1667_v52 = vsel %vm481_vm5, 1.0, %v2092_v35  ;;  %v1657_v63 = vsel %vm375_vm10, 1.0, %v2092_v35 }
  0xb3   : > { %v2354_v53 = vadd.f32 %v1667_v52, %v1651_v49  ;;  %688 = vperm.xlu0 %1939, %v2255_v15  }
  0xb5   : > { %1908 = vset.pattern.permute.xlu1 %v2089_v23 }
  0xb6   : > { %1909 = vset.pattern.permute.xlu2 %v2090_v27  ;;  %882 = vperm.xlu1 %1908, %v2204_v2  }
  0xb7   : > { %994 = vperm.xlu2 %1909, %v2204_v2  }
  0xb8   : > { %v456_v55 = vpop.permute.xlu2 %455  ;;  %v362_v56 = vpop.permute.xlu0 %361 }
  0xb9   : > { %vm484_vm8 = vcmp.eq.s32.totalorder %v456_v55, %v2317_v33  ;;  %v429_v58 = vpop.permute.xlu1 %428  ;;  %vm378_vm0 = vcmp.eq.s32.totalorder %v362_v56, %v2317_v33  ;;  %v1653_v56 = vsel %vm371_vm6, 1.0, %v2092_v35 }
  0xba   : > { %v1670_v59 = vsel %vm484_vm8, 1.0, %v2092_v35  ;;  %vm475_vm9 = vcmp.eq.s32.totalorder %v429_v58, %v2317_v33  ;;  %v1660_v38 = vsel %vm378_vm0, 1.0, %v2092_v35  ;;  %vm377_vm0 = vcmp.eq.s32.totalorder %v2310_v29, %v2317_v33 }
  0xbb   : > { %v2369_v60 = vadd.f32 %v1670_v59, %v1654_v54  ;;  %v1661_v61 = vsel %vm475_vm9, 1.0, %v2092_v35  ;;  %673 = vperm.xlu0 %1939, %v2228_v8  }
  0xbc   : > { %v2373_v62 = vadd.f32 %v1661_v61, %v1645_v57  ;;  %v1655_v57 = vsel %vm373_vm7, 1.0, %v2092_v35 }
  0xbe   : > { %1910 = vset.pattern.permute.xlu1 %v2091_v32 }
  0xbf   : > { %1911 = vset.pattern.permute.xlu2 %v2093_v47  ;;  %1106 = vperm.xlu1 %1910, %v2204_v2   ;;  %v1648_v2 = vsel %vm366_vm12, 1.0, %v2092_v35  ;;  %vm376_vm12 = vcmp.eq.s32.totalorder %v2349_v48, %v2317_v33 }
  0xc0   : > { %773 = vperm.xlu2 %1911, %v2216_v5   ;;  %v465_v0 = vpop.permute.xlu2 %464  ;;  %v1658_v24 = vsel %vm376_vm12, 1.0, %v2092_v35 }
  0xc1   : > { %vm487_vm13 = vcmp.eq.s32.totalorder %v465_v0, %v2317_v33  ;;  %v438_v17 = vpop.permute.xlu1 %437  ;;  %v435_v19 = vpop.permute.xlu0 %434 }
  0xc2   : > { %v1673_v25 = vsel %vm487_vm13, 1.0, %v2092_v35  ;;  %vm478_vm14 = vcmp.eq.s32.totalorder %v438_v17, %v2317_v33  ;;  %vm477_vm15 = vcmp.eq.s32.totalorder %v435_v19, %v2317_v33  ;;  %v1656_v19 = vsel %vm374_vm11, 1.0, %v2092_v35 }
  0xc3   : > { %v2391_v28 = vadd.f32 %v1673_v25, %v1657_v63  ;;  %v1664_v30 = vsel %vm478_vm14, 1.0, %v2092_v35  ;;  %v1663_v31 = vsel %vm477_vm15, 1.0, %v2092_v35  ;;  %694 = vperm.xlu0 %1939, %v2249_v13  }
  0xc4   : > { %v2396_v36 = vadd.f32 %v1664_v30, %v1648_v2  ;;  %v525_v37 = vadd.f32 %v1663_v31, %v1647_v26 }
  0xc7   : > { %1912 = vset.pattern.permute.xlu1 %v2090_v27 }
  0xc8   : > { %1913 = vset.pattern.permute.xlu2 %v2088_v22  ;;  %997 = vperm.xlu1 %1912, %v2216_v5   ;;  %v474_v39 = vpop.permute.xlu2 %473 }
  0xc9   : > { %664 = vperm.xlu2 %1913, %v2201_v1   ;;  %vm490_vm3 = vcmp.eq.s32.totalorder %v474_v39, %v2317_v33  ;;  %v444_v42 = vpop.permute.xlu1 %443  ;;  %v450_v43 = vpop.permute.xlu0 %449  ;;  %v1659_v39 = vsel %vm377_vm0, 1.0, %v2092_v35 }
  0xca   : > { %v1676_v44 = vsel %vm490_vm3, 1.0, %v2092_v35  ;;  %vm480_vm4 = vcmp.eq.s32.totalorder %v444_v42, %v2317_v33  ;;  %vm482_vm5 = vcmp.eq.s32.totalorder %v450_v43, %v2317_v33 }
  0xcb   : > { %v2414_v45 = vadd.f32 %v1676_v44, %v1660_v38  ;;  %v1666_v49 = vsel %vm480_vm4, 1.0, %v2092_v35  ;;  %v1668_v50 = vsel %vm482_vm5, 1.0, %v2092_v35  ;;  %1948 = vset.pattern.permute.xlu0 %v2090_v27 }
  0xcc   : > { %v2419_v51 = vadd.f32 %v1666_v49, %v1650_v20  ;;  %v2421_v52 = vadd.f32 %v1668_v50, %v1652_v34  ;;  %1012 = vperm.xlu0 %1948, %v2225_v7  }
  0xd0   : > { %1914 = vset.pattern.permute.xlu1 %v2091_v32 }
  0xd1   : > { %1915 = vset.pattern.permute.xlu2 %v2093_v47  ;;  %1109 = vperm.xlu1 %1914, %v2216_v5   ;;  %v453_v54 = vpop.permute.xlu1 %452  ;;  %v459_v55 = vpop.permute.xlu0 %458 }
  0xd2   : > { %776 = vperm.xlu2 %1915, %v2201_v1   ;;  %vm483_vm8 = vcmp.eq.s32.totalorder %v453_v54, %v2317_v33  ;;  %vm485_vm9 = vcmp.eq.s32.totalorder %v459_v55, %v2317_v33  ;;  %v547_v21 = vpop.permute.xlu2 %546 }
  0xd3   : > { %v1669_v41 = vsel %vm483_vm8, 1.0, %v2092_v35  ;;  %v1671_v58 = vsel %vm485_vm9, 1.0, %v2092_v35  ;;  %vm589_vm10 = vcmp.eq.s32.totalorder %v547_v21, %v2317_v33 }
  0xd4   : > { %v2439_v5 = vadd.f32 %v1669_v41, %v1653_v56  ;;  %v2441_v59 = vadd.f32 %v1671_v58, %v1655_v57  ;;  %v1679_v61 = vsel %vm589_vm10, 1.0, %v2092_v35  ;;  %1949 = vset.pattern.permute.xlu0 %v2093_v47 }
  0xd5   : > { %v2445_v63 = vadd.f32 %v1679_v61, %v525_v37  ;;  %764 = vperm.xlu0 %1949, %v2207_v3  }
  0xd9   : > { %1916 = vset.pattern.permute.xlu1 %v2090_v27  ;;  %v462_v0 = vpop.permute.xlu1 %461  ;;  %v468_v17 = vpop.permute.xlu0 %467 }
  0xda   : > { %1917 = vset.pattern.permute.xlu2 %v2088_v22  ;;  %1000 = vperm.xlu1 %1916, %v2201_v1   ;;  %vm486_vm13 = vcmp.eq.s32.totalorder %v462_v0, %v2317_v33  ;;  %vm488_vm14 = vcmp.eq.s32.totalorder %v468_v17, %v2317_v33  ;;  %v553_v3 = vpop.permute.xlu2 %552 }
  0xdb   : > { %v1672_v26 = vsel %vm486_vm13, 1.0, %v2092_v35  ;;  %v1674_v48 = vsel %vm488_vm14, 1.0, %v2092_v35  ;;  %vm591_vm15 = vcmp.eq.s32.totalorder %v553_v3, %v2317_v33  ;;  %667 = vperm.xlu2 %1917, %v2213_v4  }
  0xdc   : > { %v2463_v25 = vadd.f32 %v1672_v26, %v1656_v19  ;;  %v536_v2 = vadd.f32 %v1674_v48, %v1658_v24  ;;  %v1681_v30 = vsel %vm591_vm15, 1.0, %v2092_v35 }
  0xdd   : > { %v2467_v31 = vadd.f32 %v1681_v30, %v2341_v46  ;;  %767 = vperm.xlu0 %1949, %v2219_v6  }
  0xe1   : > { %v471_v37 = vpop.permute.xlu1 %470 }
  0xe2   : > { %1918 = vset.pattern.permute.xlu1 %v2093_v47  ;;  %vm489_vm1 = vcmp.eq.s32.totalorder %v471_v37, %v2317_v33  ;;  %v541_v38 = vpop.permute.xlu0 %540 }
  0xe3   : > { %v1675_v42 = vsel %vm489_vm1, 1.0, %v2092_v35  ;;  %1919 = vset.pattern.permute.xlu2 %v2089_v23  ;;  %779 = vperm.xlu1 %1918, %v2213_v4   ;;  %vm587_vm2 = vcmp.eq.s32.totalorder %v541_v38, %v2317_v33  ;;  %v653_v6 = vpop.permute.xlu2 %652  ;;  %v1223_v38 = vld [vmem:[%s3140_s1 + $0x60] sm:$0xff] }
  0xe4   : > { %v2479_v46 = vadd.f32 %v1675_v42, %v1659_v39  ;;  %v1677_v29 = vsel %vm587_vm2, 1.0, %v2092_v35  ;;  %891 = vperm.xlu2 %1919, %v2213_v4   ;;  %vm699_vm3 = vcmp.eq.s32.totalorder %v653_v6, %v2317_v33  ;;  %v1222_v42 = vld [vmem:[%s3140_s1 + $0x58] sm:$0xff] }
  0xe5   : > { %v635_v43 = vadd.f32 %v1677_v29, %v2373_v62  ;;  %v1693_v20 = vsel %vm699_vm3, 1.0, %v2092_v35  ;;  %791 = vperm.xlu0 %1949, %v2243_v12   ;;  %v1221_v29 = vld [vmem:[%s3140_s1 + $0x50] sm:$0xff] }
  0xe7   : > { %v2487_v44 = vadd.f32 %v1693_v20, %v635_v43 }
  0xea   : > { %v544_v34 = vpop.permute.xlu1 %543  ;;  %v556_v49 = vpop.permute.xlu0 %555 }
  0xeb   : > { %1920 = vset.pattern.permute.xlu1 %v2090_v27  ;;  %vm588_vm4 = vcmp.eq.s32.totalorder %v544_v34, %v2317_v33  ;;  %vm592_vm5 = vcmp.eq.s32.totalorder %v556_v49, %v2317_v33  ;;  %v1220_v34 = vld [vmem:[%s3140_s1 + $0x48] sm:$0xff] }
  0xec   : > { %v1678_v50 = vsel %vm588_vm4, 1.0, %v2092_v35  ;;  %v1682_v54 = vsel %vm592_vm5, 1.0, %v2092_v35  ;;  %1921 = vset.pattern.permute.xlu2 %v2088_v22  ;;  %1003 = vperm.xlu1 %1920, %v2213_v4   ;;  %v2496_v62 = vpop.permute.xlu2 %988 }
  0xed   : > { %v2499_v55 = vadd.f32 %v1678_v50, %v2328_v40  ;;  %v2502_v56 = vadd.f32 %v1682_v54, %v2419_v51  ;;  %670 = vperm.xlu2 %1921, %v2231_v9   ;;  %1954 = vset.pattern.permute.xlu0 %v2091_v32  ;;  %v1219_v54 = vld [vmem:[%s3140_s1 + $0x40] sm:$0xff]  ;;  %vm1035_vm2 = vcmp.eq.s32.totalorder %v2496_v62, %v2317_v33 }
  0xee   : > { %1112 = vperm.xlu0 %1954, %v2201_v1  }
  0xf2   : > { %v550_v21 = vpop.permute.xlu1 %549  ;;  %v580_v57 = vpop.permute.xlu0 %579 }
  0xf3   : > { %vm590_vm6 = vcmp.eq.s32.totalorder %v550_v21, %v2317_v33  ;;  %vm600_vm7 = vcmp.eq.s32.totalorder %v580_v57, %v2317_v33 }
  0xf4   : > { %v1680_v41 = vsel %vm590_vm6, 1.0, %v2092_v35  ;;  %v1690_v40 = vsel %vm600_vm7, 1.0, %v2092_v35  ;;  %1922 = vset.pattern.permute.xlu1 %v2087_v18 }
  0xf5   : > { %v2513_v51 = vadd.f32 %v1680_v41, %v2396_v36  ;;  %v2515_v58 = vadd.f32 %v1690_v40, %v536_v2  ;;  %1923 = vset.pattern.permute.xlu2 %v2093_v47  ;;  %576 = vperm.xlu1 %1922, %v2255_v15   ;;  %v2519_v1 = vpop.permute.xlu2 %1100  ;;  %v1226_v2 = vld [vmem:[%s3140_s1 + $0x78] sm:$0xff] }
  0xf6   : > { %782 = vperm.xlu2 %1923, %v2231_v9   ;;  %1115 = vperm.xlu0 %1954, %v2213_v4   ;;  %v1218_v41 = vld [vmem:[%s3140_s1 + $0x38] sm:$0xff]  ;;  %vm1147_vm3 = vcmp.eq.s32.totalorder %v2519_v1, %v2317_v33 }
  0xf7   : > { %1227 = vmatpush.msra.mxu0 %v1226_v2  ;;  %1779 = vmatpush.msra.mxu3 %v1226_v2  ;;  %v1215_v2 = vld [vmem:[%s3140_s1 + $0x20] sm:$0xff] }
  0xfa   : > { %v559_v61 = vpop.permute.xlu1 %558 }
  0xfb   : > { %vm593_vm8 = vcmp.eq.s32.totalorder %v559_v61, %v2317_v33  ;;  %v2524_v0 = vpop.permute.xlu0 %885  ;;  %v1216_v61 = vld [vmem:[%s3140_s1 + $0x28] sm:$0xff] }
  0xfc   : > { %v1683_v36 = vsel %vm593_vm8, 1.0, %v2092_v35  ;;  %vm926_vm10 = vcmp.eq.s32.totalorder %v2524_v0, %v2317_v33 }
  0xfd   : > { %v2528_v17 = vadd.f32 %v1683_v36, %v2354_v53  ;;  %1924 = vset.pattern.permute.xlu1 %v2089_v23  ;;  %v1728_v50 = vsel %vm926_vm10, 1.0, %v2092_v35 }
  0xfe   : > { %1925 = vset.pattern.permute.xlu2 %v2087_v18  ;;  %894 = vperm.xlu1 %1924, %v2231_v9  }
  0xff   : > { %1136 = vperm.xlu0 %1954, %v2255_v15   ;;  %561 = vperm.xlu2 %1925, %v2228_v8   ;;  %v2535_v4 = vpop.permute.xlu2 %991 }
 0x100   : > { %vm1036_vm7 = vcmp.eq.s32.totalorder %v2535_v4, %v2317_v33 }
 0x103   : > { %v2537_v19 = vpop.permute.xlu1 %876 }
 0x104   : > { %v2539_v3 = vpop.permute.xlu0 %888  ;;  %vm923_vm15 = vcmp.eq.s32.totalorder %v2537_v19, %v2317_v33 }
 0x105   : > { %vm927_vm13 = vcmp.eq.s32.totalorder %v2539_v3, %v2317_v33 }
 0x106   : > { %1926 = vset.pattern.permute.xlu1 %v2093_v47  ;;  %v1729_v3 = vsel %vm927_vm13, 1.0, %v2092_v35 }
 0x107   : > { %1127 = vperm.xlu0 %1954, %v2243_v12   ;;  %1927 = vset.pattern.permute.xlu2 %v2090_v27 }
 0x108   : > { %800 = vperm.xlu1 %1926, %v2255_v15   ;;  %1006 = vperm.xlu2 %1927, %v2231_v9   ;;  %v2546_v53 = vpop.permute.xlu2 %770 }
 0x109   : > { %vm813_vm8 = vcmp.eq.s32.totalorder %v2546_v53, %v2317_v33 }
 0x10c   : > { %v2548_v24 = vpop.permute.xlu0 %915 }
 0x10d   : > { %v2550_v26 = vpop.permute.xlu1 %655 }
 0x10e   : > { %vm700_vm1 = vcmp.eq.s32.totalorder %v2550_v26, %v2317_v33 }
 0x10f   : > { %1963 = vset.pattern.permute.xlu0 %v2087_v18  ;;  %v1694_v19 = vsel %vm700_vm1, 1.0, %v2092_v35 }
 0x110   : > { %1928 = vset.pattern.permute.xlu1 %v2089_v23  ;;  %570 = vperm.xlu0 %1963, %v2240_v11   ;;  %v1225_v11 = vld [vmem:[%s3140_s1 + $0x70] sm:$0xff] }
 0x111   : > { %1929 = vset.pattern.permute.xlu2 %v2091_v32  ;;  %912 = vperm.xlu1 %1928, %v2255_v15   ;;  %v2557_v48 = vpop.permute.xlu2 %994 }
 0x112   : > { %1118 = vperm.xlu2 %1929, %v2231_v9   ;;  %1228 = vmatpush.msra.mxu0 %v1225_v11  ;;  %v1224_v9 = vld [vmem:[%s3140_s1 + $0x68] sm:$0xff] }
 0x113   : > { %1780 = vmatpush.msra.mxu3 %v1225_v11 }
 0x114   : > { %1229 = vmatpush.msra.mxu0 %v1224_v9 }
 0x115   : > { %v2563_v30 = vpop.permute.xlu0 %658  ;;  %1781 = vmatpush.msra.mxu3 %v1224_v9  ;;  %v1214_v9 = vld [vmem:[%s3140_s1 + $0x18] sm:$0xff] }
 0x116   : > { %v2568_v37 = vpop.permute.xlu1 %879  ;;  %1230 = vmatpush.msra.mxu0 %v1223_v38  ;;  %vm701_vm4 = vcmp.eq.s32.totalorder %v2563_v30, %v2317_v33 }
 0x117   : > { %1782 = vmatpush.msra.mxu3 %v1223_v38  ;;  %vm924_vm5 = vcmp.eq.s32.totalorder %v2568_v37, %v2317_v33  ;;  %v1695_v30 = vsel %vm701_vm4, 1.0, %v2092_v35 }
 0x118   : > { %573 = vperm.xlu0 %1963, %v2237_v10   ;;  %1231 = vmatpush.msra.mxu0 %v1222_v42  ;;  %v1726_v37 = vsel %vm924_vm5, 1.0, %v2092_v35 }
 0x119   : > { %1931 = vset.pattern.permute.xlu1 %v2093_v47  ;;  %1783 = vmatpush.msra.mxu3 %v1222_v42 }
 0x11a   : > { %1932 = vset.pattern.permute.xlu2 %v2090_v27  ;;  %785 = vperm.xlu1 %1931, %v2228_v8   ;;  %v774_v39 = vpop.permute.xlu2 %773 }
 0x11b   : > { %1024 = vperm.xlu2 %1932, %v2255_v15   ;;  %vm814_vm9 = vcmp.eq.s32.totalorder %v774_v39, %v2317_v33  ;;  %1232 = vmatpush.msra.mxu0 %v1221_v29 }
 0x11c   : > { %v1712_v15 = vsel %vm814_vm9, 1.0, %v2092_v35  ;;  %1784 = vmatpush.msra.mxu3 %v1221_v29 }
 0x11d   : > { %v662_v6 = vpop.permute.xlu0 %661  ;;  %1233 = vmatpush.msra.mxu0 %v1220_v34 }
 0x11e   : > { %vm702_vm11 = vcmp.eq.s32.totalorder %v662_v6, %v2317_v33  ;;  %1785 = vmatpush.msra.mxu3 %v1220_v34  ;;  %v1213_v6 = vld [vmem:[%s3140_s1 + $0x10] sm:$0xff]  ;;  %v1211_v34 = vld [vmem:[%s3140_s1] sm:$0xff] }
 0x11f   : > { %v1696_v43 = vsel %vm702_vm11, 1.0, %v2092_v35  ;;  %v2593_v20 = vpop.permute.xlu1 %1103  ;;  %1234 = vmatpush.msra.mxu0 %v1219_v54 }
 0x120   : > { %v750_v49 = vadd.f32 %v1696_v43, %v2513_v51  ;;  %1972 = vset.pattern.permute.xlu0 %v2089_v23  ;;  %1786 = vmatpush.msra.mxu3 %v1219_v54  ;;  %vm1148_vm9 = vcmp.eq.s32.totalorder %v2593_v20, %v2317_v33 }
 0x121   : > { %909 = vperm.xlu0 %1972, %v2237_v10   ;;  %v1217_v10 = vld [vmem:[%s3140_s1 + $0x30] sm:$0xff]  ;;  %1235 = vmatpush.msra.mxu0 %v1218_v41 }
 0x122   : > { %v862_v21 = vadd.f32 %v1712_v15, %v750_v49  ;;  %1933 = vset.pattern.permute.xlu1 %v2088_v22  ;;  %1787 = vmatpush.msra.mxu3 %v1218_v41 }
 0x123   : > { %1934 = vset.pattern.permute.xlu2 %v2089_v23  ;;  %691 = vperm.xlu1 %1933, %v2252_v14   ;;  %v665_v57 = vpop.permute.xlu2 %664 }
 0x124   : > { %897 = vperm.xlu2 %1934, %v2228_v8   ;;  %v2612_v40 = vadd.f32 %v1728_v50, %v862_v21  ;;  %vm703_vm12 = vcmp.eq.s32.totalorder %v665_v57, %v2317_v33  ;;  %1236 = vmatpush.msra.mxu0 %v1217_v10 }
 0x125   : > { %v2614_v51 = vpop.permute.xlu0 %688  ;;  %1788 = vmatpush.msra.mxu3 %v1217_v10  ;;  %v1697_v36 = vsel %vm703_vm12, 1.0, %v2092_v35  ;;  %vm1037_vm12 = vcmp.eq.s32.totalorder %v2557_v48, %v2317_v33 }
 0x126   : > { %1237 = vmatpush.msra.mxu0 %v1216_v61  ;;  %v751_v38 = vadd.f32 %v1697_v36, %v2467_v31  ;;  %v1212_v31 = vld [vmem:[%s3140_s1 + $0x8] sm:$0xff]  ;;  %v1743_v48 = vsel %vm1037_vm12, 1.0, %v2092_v35  ;;  %vm711_vm1 = vcmp.eq.s32.totalorder %v2614_v51, %v2317_v33 }
 0x127   : > { %1789 = vmatpush.msra.mxu3 %v1216_v61 }
 0x128   : > { %v2623_v0 = vpop.permute.xlu1 %882  ;;  %1238 = vmatpush.msra.mxu0 %v1215_v2 }
 0x129   : > { %1975 = vset.pattern.permute.xlu0 %v2091_v32  ;;  %1790 = vmatpush.msra.mxu3 %v1215_v2  ;;  %v1725_v2 = vsel %vm923_vm15, 1.0, %v2092_v35  ;;  %vm925_vm10 = vcmp.eq.s32.totalorder %v2623_v0, %v2317_v33 }
 0x12a   : > { %1239 = vmatpush.msra.mxu0 %v1214_v9  ;;  %v1727_v53 = vsel %vm925_vm10, 1.0, %v2092_v35 }
 0x12b   : > { %1935 = vset.pattern.permute.xlu1 %v2087_v18  ;;  %1791 = vmatpush.msra.mxu3 %v1214_v9 }
 0x12c   : > { %1936 = vset.pattern.permute.xlu2 %v2093_v47  ;;  %564 = vperm.xlu1 %1935, %v2225_v7   ;;  %v777_v11 = vpop.permute.xlu2 %776 }
 0x12d   : > { %803 = vperm.xlu2 %1936, %v2252_v14   ;;  %vm815_vm14 = vcmp.eq.s32.totalorder %v777_v11, %v2317_v33  ;;  %v2641_v39 = vpop.permute.xlu0 %673  ;;  %1240 = vmatpush.msra.mxu0 %v1213_v6 }
 0x12e   : > { %v1713_v42 = vsel %vm815_vm14, 1.0, %v2092_v35  ;;  %1792 = vmatpush.msra.mxu3 %v1213_v6  ;;  %vm706_vm11 = vcmp.eq.s32.totalorder %v2641_v39, %v2317_v33 }
 0x12f   : > { %v863_v29 = vadd.f32 %v1713_v42, %v751_v38  ;;  %1241 = vmatpush.msra.mxu0 %v1212_v31  ;;  %v1741_v38 = vsel %vm1035_vm2, 1.0, %v2092_v35  ;;  %v748_v42 = vadd.f32 %v1694_v19, %v2499_v55  ;;  %v1700_v39 = vsel %vm706_vm11, 1.0, %v2092_v35 }
 0x130   : > { %1793 = vmatpush.msra.mxu3 %v1212_v31  ;;  %v1742_v31 = vsel %vm1036_vm7, 1.0, %v2092_v35 }
 0x131   : > { %v2651_v15 = vpop.permute.xlu1 %1106  ;;  %v2653_v43 = vadd.f32 %v1729_v3, %v863_v29  ;;  %1242 = vmatpush.msra.mxu0 %v1211_v34  ;;  %v1757_v3 = vsel %vm1147_vm3, 1.0, %v2092_v35 }
 0x132   : > { %1794 = vmatpush.msra.mxu3 %v1211_v34  ;;  %v1711_v34 = vsel %vm813_vm8, 1.0, %v2092_v35  ;;  %vm1149_vm14 = vcmp.eq.s32.totalorder %v2651_v15, %v2317_v33 }
 0x134   : > { %1937 = vset.pattern.permute.xlu1 %v2090_v27 }
 0x135   : > { %1938 = vset.pattern.permute.xlu2 %v2088_v22  ;;  %1009 = vperm.xlu1 %1937, %v2228_v8   ;;  %v2661_v49 = vpop.permute.xlu0 %694  ;;  %v2664_v50 = vpop.permute.xlu2 %667 }
 0x136   : > { %676 = vperm.xlu2 %1938, %v2225_v7   ;;  %vm704_vm3 = vcmp.eq.s32.totalorder %v2664_v50, %v2317_v33 }
 0x13a   : > { %v2666_v54 = vpop.permute.xlu1 %997 }
 0x13b   : > { %vm1038_vm15 = vcmp.eq.s32.totalorder %v2666_v54, %v2317_v33 }
 0x13d   : > { %1940 = vset.pattern.permute.xlu1 %v2091_v32 }
 0x13e   : > { %1941 = vset.pattern.permute.xlu2 %v2087_v18  ;;  %1121 = vperm.xlu1 %1940, %v2228_v8   ;;  %v2671_v21 = vpop.permute.xlu2 %891  ;;  %v2673_v57 = vpop.permute.xlu0 %1012 }
 0x13f   : > { %582 = vperm.xlu2 %1941, %v2249_v13   ;;  %vm928_vm7 = vcmp.eq.s32.totalorder %v2671_v21, %v2317_v33 }
 0x143   : > { %v2676_v41 = vpop.permute.xlu1 %1109 }
 0x146   : > { %1942 = vset.pattern.permute.xlu1 %v2093_v47 }
 0x147   : > { %1943 = vset.pattern.permute.xlu2 %v2090_v27  ;;  %788 = vperm.xlu1 %1942, %v2225_v7   ;;  %v2681_v10 = vpop.permute.xlu2 %670  ;;  %v765_v61 = vpop.permute.xlu0 %764 }
 0x148   : > { %1027 = vperm.xlu2 %1943, %v2252_v14   ;;  %vm811_vm0 = vcmp.eq.s32.totalorder %v765_v61, %v2317_v33  ;;  %vm705_vm8 = vcmp.eq.s32.totalorder %v2681_v10, %v2317_v33 }
 0x149   : > { %v1709_v8 = vsel %vm811_vm0, 1.0, %v2092_v35  ;;  %vm1150_vm0 = vcmp.eq.s32.totalorder %v2676_v41, %v2317_v33  ;;  %v1699_v21 = vsel %vm705_vm8, 1.0, %v2092_v35 }
 0x14a   : > { %v859_v36 = vadd.f32 %v1709_v8, %v2487_v44  ;;  %v1758_v8 = vsel %vm1148_vm9, 1.0, %v2092_v35 }
 0x14c   : > { %v971_v11 = vadd.f32 %v1725_v2, %v859_v36  ;;  %v2697_v9 = vpop.permute.xlu1 %1000 }
 0x14d   : > { %vm1039_vm4 = vcmp.eq.s32.totalorder %v2697_v9, %v2317_v33  ;;  %v1698_v9 = vsel %vm704_vm3, 1.0, %v2092_v35 }
 0x14e   : > { %v1083_v26 = vadd.f32 %v1741_v38, %v971_v11  ;;  %v1759_v38 = vsel %vm1149_vm14, 1.0, %v2092_v35 }
 0x14f   : > { %1944 = vset.pattern.permute.xlu1 %v2089_v23  ;;  %v768_v44 = vpop.permute.xlu0 %767 }
 0x150   : > { %1945 = vset.pattern.permute.xlu2 %v2091_v32  ;;  %900 = vperm.xlu1 %1944, %v2225_v7   ;;  %vm812_vm6 = vcmp.eq.s32.totalorder %v768_v44, %v2317_v33  ;;  %v2710_v62 = vpop.permute.xlu2 %782  ;;  %v1195_v1 = vadd.f32 %v1757_v3, %v1083_v26 }
 0x151   : > { %v1710_v55 = vsel %vm812_vm6, 1.0, %v2092_v35  ;;  %1139 = vperm.xlu2 %1945, %v2252_v14   ;;  %v749_v14 = vadd.f32 %v1695_v30, %v2445_v63  ;;  %vm817_vm9 = vcmp.eq.s32.totalorder %v2710_v62, %v2317_v33  ;;  %v1979_v62 = vld [vmem:[%s2198_s29 + $0x70] sm:$0xff] }
 0x152   : > { %v860_v6 = vadd.f32 %v1710_v55, %v748_v42  ;;  %1243 = vmatmul.f32.vlgmr.msra.gmra.mxu0 %v1195_v1  ;;  %v1760_v1 = vsel %vm1150_vm0, 1.0, %v2092_v35 }
 0x153   : > { %v861_v63 = vadd.f32 %v1711_v34, %v749_v14 }
 0x154   : > { %v972_v29 = vadd.f32 %v1726_v37, %v860_v6 }
 0x155   : > { %v780_v4 = vpop.permute.xlu1 %779  ;;  %v973_v36 = vadd.f32 %v1727_v53, %v861_v63 }
 0x156   : > { %v1084_v61 = vadd.f32 %v1742_v31, %v972_v29  ;;  %vm816_vm5 = vcmp.eq.s32.totalorder %v780_v4, %v2317_v33  ;;  %v2801_v4 = vld [vmem:[%s2198_s29 + $0x78] sm:$0xff] }
 0x157   : > { %v2744_v11 = vpop.permute.xlu0 %791  ;;  %v1085_v42 = vadd.f32 %v1743_v48, %v973_v36  ;;  %v1714_v6 = vsel %vm816_vm5, 1.0, %v2092_v35  ;;  %vm936_vm5 = vcmp.eq.s32.totalorder %v2548_v24, %v2317_v33  ;;  %v1358_v24 = vld [vmem:[%s3142_s3 + $0x70] sm:$0xff] }
 0x158   : > { %1946 = vset.pattern.permute.xlu1 %v2087_v18  ;;  %v1196_v20 = vadd.f32 %v1758_v8, %v1084_v61  ;;  %v753_v61 = vadd.f32 %v1699_v21, %v2528_v17  ;;  %v1981_v17 = vld [vmem:[%s2198_s29 + $0x48] sm:$0xff] }
 0x159   : > { %1947 = vset.pattern.permute.xlu2 %v2093_v47  ;;  %567 = vperm.xlu1 %1946, %v2243_v12   ;;  %v562_v0 = vpop.permute.xlu2 %561  ;;  %v1197_v44 = vadd.f32 %v1759_v38, %v1085_v42  ;;  %v1357_v21 = vld [vmem:[%s3142_s3 + $0x68] sm:$0xff] }
 0x15a   : > { %806 = vperm.xlu2 %1947, %v2249_v13   ;;  %vm594_vm13 = vcmp.eq.s32.totalorder %v562_v0, %v2317_v33  ;;  %1246 = vmatmul.f32.gmra.mxu0 %v1196_v20 }
 0x15b   : > { %v1684_v2 = vsel %vm594_vm13, 1.0, %v2092_v35 }
 0x15c   : > { %v642_v19 = vadd.f32 %v1684_v2, %v2421_v52  ;;  %v1744_v52 = vsel %vm1038_vm15, 1.0, %v2092_v35 }
 0x15d   : > { %v1086_v30 = vadd.f32 %v1744_v52, %v2612_v40 }
 0x15e   : > { %v1004_v26 = vpop.permute.xlu1 %1003  ;;  %v2747_v3 = vadd.f32 %v1700_v39, %v642_v19 }
 0x15f   : > { %v1198_v41 = vadd.f32 %v1760_v1, %v1086_v30  ;;  %vm1040_vm10 = vcmp.eq.s32.totalorder %v1004_v26, %v2317_v33 }
 0x160   : > { %v1113_v54 = vpop.permute.xlu0 %1112  ;;  %v1746_v10 = vsel %vm1040_vm10, 1.0, %v2092_v35 }
 0x161   : > { %1950 = vset.pattern.permute.xlu1 %v2088_v22  ;;  %vm1151_vm6 = vcmp.eq.s32.totalorder %v1113_v54, %v2317_v33 }
 0x162   : > { %1951 = vset.pattern.permute.xlu2 %v2089_v23  ;;  %679 = vperm.xlu1 %1950, %v2243_v12   ;;  %v2754_v15 = vpop.permute.xlu2 %1006  ;;  %v1705_v12 = vsel %vm711_vm1, 1.0, %v2092_v35  ;;  %v1761_v37 = vsel %vm1151_vm6, 1.0, %v2092_v35  ;;  %vm713_vm6 = vcmp.eq.s32.totalorder %v2661_v49, %v2317_v33 }
 0x163   : > { %918 = vperm.xlu2 %1951, %v2249_v13   ;;  %1249 = vmatmul.f32.gmra.mxu0 %v1197_v44  ;;  %vm1041_vm13 = vcmp.eq.s32.totalorder %v2754_v15, %v2317_v33  ;;  %v1707_v49 = vsel %vm713_vm6, 1.0, %v2092_v35 }
 0x164   : > { %v1747_v48 = vsel %vm1041_vm13, 1.0, %v2092_v35 }
 0x167   : > { %v577_v55 = vpop.permute.xlu1 %576 }
 0x168   : > { %vm599_vm2 = vcmp.eq.s32.totalorder %v577_v55, %v2317_v33  ;;  %v1116_v29 = vpop.permute.xlu0 %1115 }
 0x169   : > { %v1689_v13 = vsel %vm599_vm2, 1.0, %v2092_v35  ;;  %vm1152_vm11 = vcmp.eq.s32.totalorder %v1116_v29, %v2317_v33 }
 0x16a   : > { %v647_v51 = vadd.f32 %v1689_v13, %v2391_v28  ;;  %1952 = vset.pattern.permute.xlu1 %v2091_v32  ;;  %v1745_v28 = vsel %vm1039_vm4, 1.0, %v2092_v35  ;;  %v1762_v53 = vsel %vm1152_vm11, 1.0, %v2092_v35 }
 0x16b   : > { %1953 = vset.pattern.permute.xlu2 %v2087_v18  ;;  %1124 = vperm.xlu1 %1952, %v2225_v7   ;;  %v752_v18 = vadd.f32 %v1698_v9, %v2502_v56  ;;  %v1087_v7 = vadd.f32 %v1745_v28, %v2653_v43  ;;  %v1730_v56 = vsel %vm928_vm7, 1.0, %v2092_v35  ;;  %v1715_v43 = vsel %vm817_vm9, 1.0, %v2092_v35 }
 0x16c   : > { %1252 = vmatmul.f32.gmra.mxu0 %v1198_v41  ;;  %585 = vperm.xlu2 %1953, %v2261_v16   ;;  %v1119_v40 = vpop.permute.xlu2 %1118  ;;  %v759_v50 = vadd.f32 %v1705_v12, %v647_v51  ;;  %v865_v63 = vadd.f32 %v1715_v43, %v753_v61  ;;  %v1355_v61 = vld [vmem:[%s3142_s3 + $0x58] sm:$0xff] }
 0x16d   : > { %v864_v31 = vadd.f32 %v1714_v6, %v752_v18  ;;  %v1199_v14 = vadd.f32 %v1761_v37, %v1087_v7  ;;  %vm1153_vm14 = vcmp.eq.s32.totalorder %v1119_v40, %v2317_v33  ;;  %v1359_v18 = vld [vmem:[%s3142_s3 + $0x78] sm:$0xff] }
 0x16e   : > { %v1763_v26 = vsel %vm1153_vm14, 1.0, %v2092_v35  ;;  %1364 = vmatpush.msra.mxu1 %v1359_v18  ;;  %1795 = vmatpush.msrb.mxu3 %v1359_v18 }
 0x16f   : > { %v976_v8 = vadd.f32 %v1730_v56, %v864_v31 }
 0x170   : > { %v895_v16 = vpop.permute.xlu1 %894  ;;  %1365 = vmatpush.msra.mxu1 %v1358_v24  ;;  %1796 = vmatpush.msrb.mxu3 %v1358_v24 }
 0x171   : > { %vm929_vm12 = vcmp.eq.s32.totalorder %v895_v16, %v2317_v33  ;;  %v1088_v0 = vadd.f32 %v1746_v10, %v976_v8  ;;  %v1137_v15 = vpop.permute.xlu0 %1136 }
 0x172   : > { %v1731_v20 = vsel %vm929_vm12, 1.0, %v2092_v35  ;;  %vm1159_vm1 = vcmp.eq.s32.totalorder %v1137_v15, %v2317_v33  ;;  %1366 = vmatpush.msra.mxu1 %v1357_v21  ;;  %1797 = vmatpush.msrb.mxu3 %v1357_v21 }
 0x173   : > { %1955 = vset.pattern.permute.xlu1 %v2090_v27  ;;  %v977_v36 = vadd.f32 %v1731_v20, %v865_v63  ;;  %v1200_v2 = vadd.f32 %v1762_v53, %v1088_v0  ;;  %v1769_v12 = vsel %vm1159_vm1, 1.0, %v2092_v35  ;;  %v1354_v20 = vld [vmem:[%s3142_s3 + $0x50] sm:$0xff]  ;;  %vm1043_vm1 = vcmp.eq.s32.totalorder %v2673_v57, %v2317_v33 }
 0x174   : > { %1255 = vmatmul.f32.gmra.mxu0 %v1199_v14  ;;  %1956 = vset.pattern.permute.xlu2 %v2088_v22 }
 0x175   : > { %1030 = vperm.xlu1 %1955, %v1979_v62   ;;  %697 = vperm.xlu2 %1956, %v2801_v4   ;;  %v1025_v34 = vpop.permute.xlu2 %1024  ;;  %v1089_v38 = vadd.f32 %v1747_v48, %v977_v36  ;;  %v1983_v48 = vld [vmem:[%s2198_s29 + $0x58] sm:$0xff] }
 0x176   : > { %vm1047_vm0 = vcmp.eq.s32.totalorder %v1025_v34, %v2317_v33 }
 0x177   : > { %v1201_v44 = vadd.f32 %v1763_v26, %v1089_v38  ;;  %v1753_v54 = vsel %vm1047_vm0, 1.0, %v2092_v35 }
 0x17a   : > { %v801_v39 = vpop.permute.xlu1 %800 }
 0x17b   : > { %vm823_vm15 = vcmp.eq.s32.totalorder %v801_v39, %v2317_v33  ;;  %v1351_v39 = vld [vmem:[%s3142_s3 + $0x38] sm:$0xff] }
 0x17c   : > { %1258 = vmatmul.f32.gmra.mxu0 %v1200_v2  ;;  %v1721_v42 = vsel %vm823_vm15, 1.0, %v2092_v35 }
 0x17d   : > { %1957 = vset.pattern.permute.xlu1 %v2089_v23  ;;  %1958 = vset.pattern.permute.xlu2 %v2091_v32  ;;  %v871_v1 = vadd.f32 %v1721_v42, %v759_v50  ;;  %v2833_v50 = vld [vmem:[%s2198_s29 + $0x50] sm:$0xff]  ;;  %s287_s29 = sand.u32 1, %s2072_s25  }
 0x17e   : > { %903 = vperm.xlu1 %1957, %v1981_v17   ;;  %1142 = vperm.xlu2 %1958, %v1979_v62   ;;  %v2815_v19 = vpop.permute.xlu2 %897  ;;  %v1356_v62 = vld [vmem:[%s3142_s3 + $0x60] sm:$0xff]  ;;  %s1642_s13 = sshll.u32 %s287_s29, 7  ;;  %s1547_s23 = scalar_lea.sflag [#allocation4], %s287_s29 }
 0x17f   : > { %1367 = vmatpush.msra.mxu1 %v1356_v62  ;;  %1798 = vmatpush.msrb.mxu3 %v1356_v62  ;;  %vm930_vm12 = vcmp.eq.s32.totalorder %v2815_v19, %v2317_v33  ;;  %v1350_v19 = vld [vmem:[%s3142_s3 + $0x30] sm:$0xff]  ;;  %s3066_s16 = scalar_lea.vmem [#allocation5], %s1642_s13 }
 0x180   : > { %v1732_v38 = vsel %vm930_vm12, 1.0, %v2092_v35  ;;  %s1559_s21 = sshll.u32 %s3066_s16, 4  ;;  %s1560_s21 = int_to_ptr.vmem [resolvable:$true] %s1559_s21 }
 0x181   : > { %1368 = vmatpush.msra.mxu1 %v1355_v61  ;;  %1799 = vmatpush.msrb.mxu3 %v1355_v61 }
 0x183   : > { %v913_v52 = vpop.permute.xlu1 %912  ;;  %1369 = vmatpush.msra.mxu1 %v1354_v20  ;;  %1800 = vmatpush.msrb.mxu3 %v1354_v20 }
 0x184   : > { %vm935_vm2 = vcmp.eq.s32.totalorder %v913_v52, %v2317_v33  ;;  %1261 = vmatmul.f32.gmra.mxu0 %v1201_v44  ;;  %v1348_v52 = vld [vmem:[%s3142_s3 + $0x20] sm:$0xff] }
 0x185   : > { %v1737_v55 = vsel %vm935_vm2, 1.0, %v2092_v35 }
 0x186   : > { %v983_v30 = vadd.f32 %v1737_v55, %v871_v1  ;;  %1959 = vset.pattern.permute.xlu1 %v2093_v47  ;;  %1960 = vset.pattern.permute.xlu2 %v2090_v27 }
 0x187   : > { %809 = vperm.xlu1 %1959, %v2801_v4   ;;  %1015 = vperm.xlu2 %1960, %v1981_v17   ;;  %v804_v13 = vpop.permute.xlu2 %803 }
 0x188   : > { %v1095_v51 = vadd.f32 %v1753_v54, %v983_v30  ;;  %vm824_vm3 = vcmp.eq.s32.totalorder %v804_v13, %v2317_v33  ;;  %v1347_v30 = vld [vmem:[%s3142_s3 + $0x18] sm:$0xff] }
 0x189   : > { %v1722_v6 = vsel %vm824_vm3, 1.0, %v2092_v35 }
 0x18a   : > { %v1207_v41 = vadd.f32 %v1769_v12, %v1095_v51  ;;  %v1346_v51 = vld [vmem:[%s3142_s3 + $0x10] sm:$0xff] }
 0x18c   : > { %v2828_v40 = vpop.permute.xlu1 %785  ;;  %1279 = vmatmul.f32.vlgmr.msra.gmra.mxu3 %v1207_v41  ;;  %v1345_v41 = vld [vmem:[%s3142_s3 + $0x8] sm:$0xff] }
 0x18d   : > { %vm818_vm10 = vcmp.eq.s32.totalorder %v2828_v40, %v2317_v33 }
 0x18e   : > { %v1716_v0 = vsel %vm818_vm10, 1.0, %v2092_v35 }
 0x18f   : > { %1961 = vset.pattern.permute.xlu1 %v2088_v22  ;;  %1962 = vset.pattern.permute.xlu2 %v2089_v23  ;;  %v866_v2 = vadd.f32 %v1716_v0, %v2747_v3  ;;  %v1349_v3 = vld [vmem:[%s3142_s3 + $0x28] sm:$0xff] }
 0x190   : > { %682 = vperm.xlu1 %1961, %v2833_v50   ;;  %921 = vperm.xlu2 %1962, %v2801_v4   ;;  %v677_v9 = vpop.permute.xlu2 %676 }
 0x191   : > { %vm707_vm8 = vcmp.eq.s32.totalorder %v677_v9, %v2317_v33  ;;  %v978_v15 = vadd.f32 %v1732_v38, %v866_v2 }
 0x195   : > { %v692_v28 = vpop.permute.xlu1 %691 }
 0x196   : > { %vm712_vm4 = vcmp.eq.s32.totalorder %v692_v28, %v2317_v33 }
 0x197   : > { %v1706_v37 = vsel %vm712_vm4, 1.0, %v2092_v35  ;;  %vm820_vm4 = vcmp.eq.s32.totalorder %v2744_v11, %v2317_v33 }
 0x198   : > { %v760_v7 = vadd.f32 %v1706_v37, %v2515_v58  ;;  %1964 = vset.pattern.permute.xlu1 %v2093_v47  ;;  %1965 = vset.pattern.permute.xlu2 %v2090_v27  ;;  %v1738_v58 = vsel %vm936_vm5, 1.0, %v2092_v35 }
 0x199   : > { %794 = vperm.xlu1 %1964, %v2833_v50   ;;  %1033 = vperm.xlu2 %1965, %v2801_v4   ;;  %v583_v16 = vpop.permute.xlu2 %582 }
 0x19a   : > { %v872_v29 = vadd.f32 %v1722_v6, %v760_v7  ;;  %vm601_vm7 = vcmp.eq.s32.totalorder %v583_v16, %v2317_v33 }
 0x19b   : > { %v1691_v31 = vsel %vm601_vm7, 1.0, %v2092_v35 }
 0x19c   : > { %v649_v14 = vadd.f32 %v1691_v31, %v2479_v46  ;;  %v984_v56 = vadd.f32 %v1738_v58, %v872_v29  ;;  %v1701_v46 = vsel %vm707_vm8, 1.0, %v2092_v35  ;;  %v2955_v29 = vld [vmem:[%s3141_s2] ss:$0 sm:$0xff] }
 0x19e   : > { %v565_v43 = vpop.permute.xlu1 %564  ;;  %v2865_v10 = vadd.f32 %v1707_v49, %v649_v14 }
 0x19f   : > { %vm595_vm9 = vcmp.eq.s32.totalorder %v565_v43, %v2317_v33 }
 0x1a0   : > { %v1685_v34 = vsel %vm595_vm9, 1.0, %v2092_v35 }
 0x1a1   : > { %v643_v8 = vadd.f32 %v1685_v34, %v2439_v5  ;;  %1966 = vset.pattern.permute.xlu1 %v2089_v23  ;;  %1967 = vset.pattern.permute.xlu2 %v2091_v32  ;;  %v1353_v5 = vld [vmem:[%s3142_s3 + $0x48] sm:$0xff]  ;;  %v1352_v23 = vld [vmem:[%s3142_s3 + $0x40] sm:$0xff]  ;;  %v1718_v34 = vsel %vm820_vm4, 1.0, %v2092_v35 }
 0x1a2   : > { %906 = vperm.xlu1 %1966, %v2833_v50   ;;  %1145 = vperm.xlu2 %1967, %v2801_v4   ;;  %v1028_v53 = vpop.permute.xlu2 %1027 }
 0x1a3   : > { %v2884_v63 = vadd.f32 %v1701_v46, %v643_v8  ;;  %vm1048_vm11 = vcmp.eq.s32.totalorder %v1028_v53, %v2317_v33  ;;  %1370 = vmatpush.msra.mxu1 %v1353_v5  ;;  %1801 = vmatpush.msrb.mxu3 %v1353_v5 }
 0x1a4   : > { %v1754_v36 = vsel %vm1048_vm11, 1.0, %v2092_v35 }
 0x1a5   : > { %1371 = vmatpush.msra.mxu1 %v1352_v23  ;;  %1802 = vmatpush.msrb.mxu3 %v1352_v23  ;;  %v1096_v26 = vadd.f32 %v1754_v36, %v984_v56 }
 0x1a7   : > { %v1010_v4 = vpop.permute.xlu1 %1009  ;;  %1372 = vmatpush.msra.mxu1 %v1351_v39  ;;  %1803 = vmatpush.msrb.mxu3 %v1351_v39 }
 0x1a8   : > { %vm1042_vm13 = vcmp.eq.s32.totalorder %v1010_v4, %v2317_v33 }
 0x1a9   : > { %v1748_v42 = vsel %vm1042_vm13, 1.0, %v2092_v35  ;;  %1373 = vmatpush.msra.mxu1 %v1350_v19  ;;  %1804 = vmatpush.msrb.mxu3 %v1350_v19 }
 0x1aa   : > { %1968 = vset.pattern.permute.xlu1 %v2090_v27  ;;  %1969 = vset.pattern.permute.xlu2 %v2088_v22  ;;  %v1090_v54 = vadd.f32 %v1748_v42, %v978_v15 }
 0x1ab   : > { %1018 = vperm.xlu1 %1968, %v2833_v50   ;;  %685 = vperm.xlu2 %1969, %v1983_v48   ;;  %v1140_v17 = vpop.permute.xlu2 %1139 }
 0x1ac   : > { %vm1160_vm14 = vcmp.eq.s32.totalorder %v1140_v17, %v2317_v33  ;;  %1374 = vmatpush.msra.mxu1 %v1349_v3  ;;  %1805 = vmatpush.msrb.mxu3 %v1349_v3 }
 0x1ad   : > { %v1770_v22 = vsel %vm1160_vm14, 1.0, %v2092_v35 }
 0x1ae   : > { %v1208_v44 = vadd.f32 %v1770_v22, %v1096_v26  ;;  %1375 = vmatpush.msra.mxu1 %v1348_v52  ;;  %1806 = vmatpush.msrb.mxu3 %v1348_v52 }
 0x1b0   : > { %v1122_v1 = vpop.permute.xlu1 %1121  ;;  %1282 = vmatmul.f32.gmra.mxu3 %v1208_v44  ;;  %1376 = vmatpush.msra.mxu1 %v1347_v30 }
 0x1b1   : > { %vm1154_vm15 = vcmp.eq.s32.totalorder %v1122_v1, %v2317_v33  ;;  %1807 = vmatpush.msrb.mxu3 %v1347_v30 }
 0x1b2   : > { %v1764_v55 = vsel %vm1154_vm15, 1.0, %v2092_v35  ;;  %1377 = vmatpush.msra.mxu1 %v1346_v51 }
 0x1b3   : > { %1970 = vset.pattern.permute.xlu1 %v2091_v32  ;;  %1971 = vset.pattern.permute.xlu2 %v2093_v47  ;;  %v1202_v12 = vadd.f32 %v1764_v55, %v1090_v54  ;;  %v1344_v47 = vld [vmem:[%s3142_s3] sm:$0xff]  ;;  %v1128_v54 = vpop.permute.xlu0 %1127 }
 0x1b4   : > { %1130 = vperm.xlu1 %1970, %v2833_v50   ;;  %797 = vperm.xlu2 %1971, %v1983_v48   ;;  %v2929_v13 = vpop.permute.xlu2 %806  ;;  %vm1156_vm12 = vcmp.eq.s32.totalorder %v1128_v54, %v2317_v33 }
 0x1b5   : > { %1264 = vmatmul.f32.gmra.mxu0 %v1202_v12  ;;  %1378 = vmatpush.msra.mxu1 %v1345_v41  ;;  %vm825_vm7 = vcmp.eq.s32.totalorder %v2929_v13, %v2317_v33 }
 0x1b6   : > { %1808 = vmatpush.msrb.mxu3 %v1346_v51  ;;  %v1723_v36 = vsel %vm825_vm7, 1.0, %v2092_v35 }
 0x1b7   : > { %1379 = vmatpush.msra.mxu1 %v1344_v47  ;;  %v873_v17 = vadd.f32 %v1723_v36, %v2865_v10 }
 0x1b8   : > { %1809 = vmatpush.msrb.mxu3 %v1345_v41 }
 0x1b9   : > { %v789_v40 = vpop.permute.xlu1 %788 }
 0x1ba   : > { %vm819_vm0 = vcmp.eq.s32.totalorder %v789_v40, %v2317_v33  ;;  %1810 = vmatpush.msrb.mxu3 %v1344_v47  ;;  %v1766_v40 = vsel %vm1156_vm12, 1.0, %v2092_v35 }
 0x1bb   : > { %v1717_v9 = vsel %vm819_vm0, 1.0, %v2092_v35 }
 0x1bc   : > { %1973 = vset.pattern.permute.xlu1 %v2090_v27  ;;  %1974 = vset.pattern.permute.xlu2 %v2091_v32  ;;  %v867_v6 = vadd.f32 %v1717_v9, %v2884_v63  ;;  %v1749_v27 = vsel %vm1043_vm1, 1.0, %v2092_v35 }
 0x1bd   : > { %1021 = vperm.xlu1 %1973, %v1983_v48   ;;  %v919_v50 = vpop.permute.xlu2 %918  ;;  %1133 = vperm.xlu2 %1974, %v1983_v48  }
 0x1be   : > { %vm937_vm8 = vcmp.eq.s32.totalorder %v919_v50, %v2317_v33 }
 0x1bf   : > { %v1739_v2 = vsel %vm937_vm8, 1.0, %v2092_v35 }
 0x1c0   : > { %v985_v38 = vadd.f32 %v1739_v2, %v873_v17  ;;  %v1459_v2 = vld [vmem:[#allocation2 + $0x70] sm:$0xff]  ;;  %v1458_v17 = vld [vmem:[#allocation2 + $0x68] sm:$0xff] }
 0x1c2   : > { %v901_v28 = vpop.permute.xlu1 %900 }
 0x1c3   : > { %vm931_vm2 = vcmp.eq.s32.totalorder %v901_v28, %v2317_v33 }
 0x1c4   : > { %v1733_v32 = vsel %vm931_vm2, 1.0, %v2092_v35 }
 0x1c5   : > { %v979_v37 = vadd.f32 %v1733_v32, %v867_v6 }
 0x1c6   : > { %v2950_v18 = vpop.permute.xlu2 %585 }
 0x1c7   : > { %v1091_v7 = vadd.f32 %v1749_v27, %v979_v37  ;;  %vm602_vm14 = vcmp.eq.s32.totalorder %v2950_v18, %v2317_v33 }
 0x1c8   : > { %v1692_v9 = vsel %vm602_vm14, 1.0, %v2092_v35 }
 0x1c9   : > { %v650_v37 = vadd.f32 %v1692_v9, %v2414_v45 }
 0x1cb   : > { %v568_v16 = vpop.permute.xlu1 %567 }
 0x1cc   : > { %vm596_vm3 = vcmp.eq.s32.totalorder %v568_v16, %v2317_v33 }
 0x1cd   : > { %v1686_v49 = vsel %vm596_vm3, 1.0, %v2092_v35 }
 0x1ce   : > { %v644_v21 = vadd.f32 %v1686_v49, %v2369_v60 }
 0x1cf   : > { %v1244_v57 = vpop.f32.mrf.mxu0  ;;  %v2958_v24 = vpop.permute.xlu2 %697 }
 0x1d0   : > { %v1292_v58 = vmul.f32 0.125, %v1244_v57  ;;  %vm714_vm15 = vcmp.eq.s32.totalorder %v2958_v24, %v2317_v33 }
 0x1d1   : > { %v1708_v27 = vsel %vm714_vm15, 1.0, %v2092_v35 }
 0x1d2   : > { %v1312_v31 = vadd.f32 %v2955_v29, %v1292_v58  ;;  %v762_v16 = vadd.f32 %v1708_v27, %v650_v37  ;;  %v1451_v37 = vld [vmem:[#allocation2 + $0x30] sm:$0xff] }
 0x1d4   : > { %v680_v14 = vpop.permute.xlu1 %679  ;;  %v1328_v56 = vmax.f32 %v1312_v31, 0.0 }
 0x1d5   : > { %vm708_vm5 = vcmp.eq.s32.totalorder %v680_v14, %v2317_v33 }
 0x1d6   : > { %v1702_v43 = vsel %vm708_vm5, 1.0, %v2092_v35  ;;  %1380 = vmatmul.f32.vlgmr.msra.gmra.mxu1 %v1328_v56 }
 0x1d7   : > { %v756_v62 = vadd.f32 %v1702_v43, %v644_v21  ;;  %v1247_v46 = vpop.f32.mrf.mxu0 }
 0x1d8   : > { %v1293_v61 = vmul.f32 0.125, %v1247_v46  ;;  %v1143_v8 = vpop.permute.xlu2 %1142 }
 0x1d9   : > { %v868_v53 = vadd.f32 %v1718_v34, %v756_v62  ;;  %vm1161_vm9 = vcmp.eq.s32.totalorder %v1143_v8, %v2317_v33 }
 0x1da   : > { %v1313_v20 = vadd.f32 %v2955_v29, %v1293_v61  ;;  %v1771_v26 = vsel %vm1161_vm9, 1.0, %v2092_v35 }
 0x1dc   : > { %v1329_v63 = vmax.f32 %v1313_v20, 0.0 }
 0x1dd   : > { %v1125_v5 = vpop.permute.xlu1 %1124 }
 0x1de   : > { %vm1155_vm6 = vcmp.eq.s32.totalorder %v1125_v5, %v2317_v33  ;;  %1383 = vmatmul.f32.gmra.mxu1 %v1329_v63 }
 0x1df   : > { %v1765_v60 = vsel %vm1155_vm6, 1.0, %v2092_v35 }
 0x1e0   : > { %v1250_v11 = vpop.f32.mrf.mxu0  ;;  %v1203_v23 = vadd.f32 %v1765_v60, %v1091_v7 }
 0x1e1   : > { %v1294_v4 = vmul.f32 0.125, %v1250_v11  ;;  %v1016_v0 = vpop.permute.xlu2 %1015 }
 0x1e2   : > { %1267 = vmatmul.f32.gmra.mxu0 %v1203_v23  ;;  %vm1044_vm11 = vcmp.eq.s32.totalorder %v1016_v0, %v2317_v33  ;;  %v571_v0 = vpop.permute.xlu0 %570 }
 0x1e3   : > { %v1314_v39 = vadd.f32 %v2955_v29, %v1294_v4  ;;  %v1750_v12 = vsel %vm1044_vm11, 1.0, %v2092_v35  ;;  %vm597_vm4 = vcmp.eq.s32.totalorder %v571_v0, %v2317_v33 }
 0x1e5   : > { %v1330_v48 = vmax.f32 %v1314_v39, 0.0  ;;  %v1460_v39 = vld [vmem:[#allocation2 + $0x78] sm:$0xff] }
 0x1e6   : > { %1465 = vmatpush.msra.mxu2 %v1460_v39  ;;  %1811 = vmatpush.msra.mxu3 %v1460_v39 }
 0x1e7   : > { %v1031_v19 = vpop.permute.xlu1 %1030  ;;  %1386 = vmatmul.f32.gmra.mxu1 %v1330_v48  ;;  %v1687_v48 = vsel %vm597_vm4, 1.0, %v2092_v35 }
 0x1e8   : > { %vm1049_vm10 = vcmp.eq.s32.totalorder %v1031_v19, %v2317_v33  ;;  %1466 = vmatpush.msra.mxu2 %v1459_v2  ;;  %1812 = vmatpush.msra.mxu3 %v1459_v2 }
 0x1e9   : > { %v1755_v22 = vsel %vm1049_vm10, 1.0, %v2092_v35  ;;  %v1253_v3 = vpop.f32.mrf.mxu0 }
 0x1ea   : > { %v1097_v42 = vadd.f32 %v1755_v22, %v985_v38  ;;  %v1295_v44 = vmul.f32 0.125, %v1253_v3  ;;  %v922_v15 = vpop.permute.xlu2 %921  ;;  %v645_v22 = vadd.f32 %v1687_v48, %v2441_v59  ;;  %v574_v3 = vpop.permute.xlu0 %573  ;;  %1467 = vmatpush.msra.mxu2 %v1458_v17  ;;  %1813 = vmatpush.msra.mxu3 %v1458_v17 }
 0x1eb   : > { %vm938_vm0 = vcmp.eq.s32.totalorder %v922_v15, %v2317_v33  ;;  %vm598_vm9 = vcmp.eq.s32.totalorder %v574_v3, %v2317_v33 }
 0x1ec   : > { %v1209_v52 = vadd.f32 %v1771_v26, %v1097_v42  ;;  %v1315_v1 = vadd.f32 %v2955_v29, %v1295_v44  ;;  %v1740_v24 = vsel %vm938_vm0, 1.0, %v2092_v35  ;;  %v1457_v26 = vld [vmem:[#allocation2 + $0x60] sm:$0xff]  ;;  %v1456_v44 = vld [vmem:[#allocation2 + $0x58] sm:$0xff] }
 0x1ed   : > { %1468 = vmatpush.msra.mxu2 %v1457_v26  ;;  %1814 = vmatpush.msra.mxu3 %v1457_v26 }
 0x1ee   : > { %1285 = vmatmul.f32.gmra.mxu3 %v1209_v52  ;;  %v1331_v10 = vmax.f32 %v1315_v1, 0.0  ;;  %v1455_v1 = vld [vmem:[#allocation2 + $0x50] sm:$0xff] }
 0x1ef   : > { %1469 = vmatpush.msra.mxu2 %v1456_v44  ;;  %1815 = vmatpush.msra.mxu3 %v1456_v44 }
 0x1f0   : > { %v904_v55 = vpop.permute.xlu1 %903  ;;  %1389 = vmatmul.f32.gmra.mxu1 %v1331_v10 }
 0x1f1   : > { %vm932_vm13 = vcmp.eq.s32.totalorder %v904_v55, %v2317_v33  ;;  %v1256_v30 = vpop.f32.mrf.mxu0  ;;  %v1454_v55 = vld [vmem:[#allocation2 + $0x48] sm:$0xff]  ;;  %1470 = vmatpush.msra.mxu2 %v1455_v1  ;;  %1816 = vmatpush.msra.mxu3 %v1455_v1 }
 0x1f2   : > { %v1734_v13 = vsel %vm932_vm13, 1.0, %v2092_v35  ;;  %v1296_v51 = vmul.f32 0.125, %v1256_v30  ;;  %v1688_v30 = vsel %vm598_vm9, 1.0, %v2092_v35 }
 0x1f3   : > { %v980_v41 = vadd.f32 %v1734_v13, %v868_v53  ;;  %v1034_v47 = vpop.permute.xlu2 %1033  ;;  %1471 = vmatpush.msra.mxu2 %v1454_v55  ;;  %1817 = vmatpush.msra.mxu3 %v1454_v55 }
 0x1f4   : > { %v1316_v50 = vadd.f32 %v2955_v29, %v1296_v51  ;;  %vm1050_vm1 = vcmp.eq.s32.totalorder %v1034_v47, %v2317_v33  ;;  %v1453_v51 = vld [vmem:[#allocation2 + $0x40] sm:$0xff]  ;;  %v910_v47 = vpop.permute.xlu0 %909 }
 0x1f5   : > { %v1092_v28 = vadd.f32 %v1750_v12, %v980_v41  ;;  %v1756_v14 = vsel %vm1050_vm1, 1.0, %v2092_v35  ;;  %1472 = vmatpush.msra.mxu2 %v1453_v51  ;;  %1818 = vmatpush.msra.mxu3 %v1453_v51  ;;  %vm934_vm13 = vcmp.eq.s32.totalorder %v910_v47, %v2317_v33 }
 0x1f6   : > { %v1332_v6 = vmax.f32 %v1316_v50, 0.0  ;;  %v646_v50 = vadd.f32 %v1688_v30, %v2463_v25  ;;  %v1736_v25 = vsel %vm934_vm13, 1.0, %v2092_v35 }
 0x1f7   : > { %v1204_v32 = vadd.f32 %v1766_v40, %v1092_v28  ;;  %v1452_v28 = vld [vmem:[#allocation2 + $0x38] sm:$0xff] }
 0x1f8   : > { %1392 = vmatmul.f32.gmra.mxu1 %v1332_v6  ;;  %1473 = vmatpush.msra.mxu2 %v1452_v28 }
 0x1f9   : > { %v810_v18 = vpop.permute.xlu1 %809  ;;  %v1259_v7 = vpop.f32.mrf.mxu0  ;;  %1270 = vmatmul.f32.gmra.mxu0 %v1204_v32  ;;  %1819 = vmatpush.msra.mxu3 %v1452_v28 }
 0x1fa   : > { %vm826_vm2 = vcmp.eq.s32.totalorder %v810_v18, %v2317_v33  ;;  %v1297_v57 = vmul.f32 0.125, %v1259_v7  ;;  %1474 = vmatpush.msra.mxu2 %v1451_v37 }
 0x1fb   : > { %v1724_v58 = vsel %vm826_vm2, 1.0, %v2092_v35  ;;  %1820 = vmatpush.msra.mxu3 %v1451_v37 }
 0x1fc   : > { %v874_v49 = vadd.f32 %v1724_v58, %v762_v16  ;;  %v1146_v31 = vpop.permute.xlu2 %1145  ;;  %v1317_v45 = vadd.f32 %v2955_v29, %v1297_v57  ;;  %v1450_v16 = vld [vmem:[#allocation2 + $0x28] sm:$0xff]  ;;  %v1449_v57 = vld [vmem:[#allocation2 + $0x20] sm:$0xff] }
 0x1fd   : > { %vm1162_vm3 = vcmp.eq.s32.totalorder %v1146_v31, %v2317_v33  ;;  %1475 = vmatpush.msra.mxu2 %v1450_v16  ;;  %1821 = vmatpush.msra.mxu3 %v1450_v16 }
 0x1fe   : > { %v986_v56 = vadd.f32 %v1740_v24, %v874_v49  ;;  %v1333_v21 = vmax.f32 %v1317_v45, 0.0  ;;  %v1772_v43 = vsel %vm1162_vm3, 1.0, %v2092_v35  ;;  %v1448_v49 = vld [vmem:[#allocation2 + $0x18] sm:$0xff] }
 0x1ff   : > { %1476 = vmatpush.msra.mxu2 %v1449_v57  ;;  %1822 = vmatpush.msra.mxu3 %v1449_v57 }
 0x200   : > { %1395 = vmatmul.f32.gmra.mxu1 %v1333_v21  ;;  %v1098_v62 = vadd.f32 %v1756_v14, %v986_v56 }
 0x201   : > { %v1262_v46 = vpop.f32.mrf.mxu0  ;;  %1477 = vmatpush.msra.mxu2 %v1448_v49  ;;  %1823 = vmatpush.msra.mxu3 %v1448_v49 }
 0x202   : > { %v1298_v34 = vmul.f32 0.125, %v1262_v46  ;;  %v683_v61 = vpop.permute.xlu1 %682  ;;  %v1210_v8 = vadd.f32 %v1772_v43, %v1098_v62 }
 0x203   : > { %vm709_vm5 = vcmp.eq.s32.totalorder %v683_v61, %v2317_v33 }
 0x204   : > { %1288 = vmatmul.f32.gmra.mxu3 %v1210_v8  ;;  %v1318_v53 = vadd.f32 %v2955_v29, %v1298_v34  ;;  %v1703_v38 = vsel %vm709_vm5, 1.0, %v2092_v35  ;;  %v1447_v34 = vld [vmem:[#allocation2 + $0x10] sm:$0xff]  ;;  %v1446_v8 = vld [vmem:[#allocation2 + $0x8] sm:$0xff] }
 0x205   : > { %v686_v36 = vpop.permute.xlu2 %685  ;;  %v757_v15 = vadd.f32 %v1703_v38, %v645_v22  ;;  %1478 = vmatpush.msra.mxu2 %v1447_v34  ;;  %1824 = vmatpush.msra.mxu3 %v1447_v34 }
 0x206   : > { %v1334_v20 = vmax.f32 %v1318_v53, 0.0  ;;  %vm710_vm10 = vcmp.eq.s32.totalorder %v686_v36, %v2317_v33  ;;  %v1445_v53 = vld [vmem:[#allocation2] sm:$0xff] }
 0x207   : > { %v1704_v41 = vsel %vm710_vm10, 1.0, %v2092_v35  ;;  %1479 = vmatpush.msra.mxu2 %v1446_v8  ;;  %1825 = vmatpush.msra.mxu3 %v1446_v8 }
 0x208   : > { %1398 = vmatmul.f32.gmra.mxu1 %v1334_v20  ;;  %v758_v32 = vadd.f32 %v1704_v41, %v646_v50 }
 0x209   : > { %1480 = vmatpush.msra.mxu2 %v1445_v53  ;;  %1826 = vmatpush.msra.mxu3 %v1445_v53 }
 0x20b   : > { %v795_v63 = vpop.permute.xlu1 %794 }
 0x20c   : > { %vm821_vm6 = vcmp.eq.s32.totalorder %v795_v63, %v2317_v33  ;;  %v3039_v63 = vld [vmem:[%s3143_s4] ss:$0 sm:$0xff] }
 0x20d   : > { %v1719_v42 = vsel %vm821_vm6, 1.0, %v2092_v35 }
 0x20e   : > { %v869_v10 = vadd.f32 %v1719_v42, %v757_v15  ;;  %v798_v59 = vpop.permute.xlu2 %797 }
 0x20f   : > { %v1280_v5 = vpop.f32.mrf.mxu3  ;;  %vm822_vm11 = vcmp.eq.s32.totalorder %v798_v59, %v2317_v33 }
 0x210   : > { %v1304_v60 = vmul.f32 0.125, %v1280_v5  ;;  %v1720_v6 = vsel %vm822_vm11, 1.0, %v2092_v35 }
 0x211   : > { %v870_v7 = vadd.f32 %v1720_v6, %v758_v32 }
 0x212   : > { %v1324_v11 = vadd.f32 %v2955_v29, %v1304_v60 }
 0x213   : > { %v982_v58 = vadd.f32 %v1736_v25, %v870_v7 }
 0x214   : > { %v1340_v23 = vmax.f32 %v1324_v11, 0.0  ;;  %v907_v4 = vpop.permute.xlu1 %906 }
 0x215   : > { %vm933_vm7 = vcmp.eq.s32.totalorder %v907_v4, %v2317_v33 }
 0x216   : > { %1416 = vmatmul.f32.vlgmr.msrb.gmra.mxu3 %v1340_v23  ;;  %v1735_v52 = vsel %vm933_vm7, 1.0, %v2092_v35 }
 0x217   : > { %v981_v12 = vadd.f32 %v1735_v52, %v869_v10  ;;  %v1134_v18 = vpop.permute.xlu2 %1133 }
 0x218   : > { %vm1158_vm14 = vcmp.eq.s32.totalorder %v1134_v18, %v2317_v33 }
 0x219   : > { %v1768_v45 = vsel %vm1158_vm14, 1.0, %v2092_v35 }
 0x21d   : > { %v1019_v19 = vpop.permute.xlu1 %1018 }
 0x21e   : > { %vm1045_vm8 = vcmp.eq.s32.totalorder %v1019_v19, %v2317_v33 }
 0x21f   : > { %v1751_v54 = vsel %vm1045_vm8, 1.0, %v2092_v35 }
 0x220   : > { %v1093_v40 = vadd.f32 %v1751_v54, %v981_v12 }
 0x226   : > { %v1131_v13 = vpop.permute.xlu1 %1130 }
 0x227   : > { %vm1157_vm12 = vcmp.eq.s32.totalorder %v1131_v13, %v2317_v33 }
 0x228   : > { %v1767_v9 = vsel %vm1157_vm12, 1.0, %v2092_v35 }
 0x229   : > { %v1205_v27 = vadd.f32 %v1767_v9, %v1093_v40 }
 0x22b   : > { %1273 = vmatmul.f32.gmra.mxu0 %v1205_v27 }
 0x22f   : > { %v1022_v24 = vpop.permute.xlu1 %1021 }
 0x230   : > { %vm1046_vm15 = vcmp.eq.s32.totalorder %v1022_v24, %v2317_v33 }
 0x231   : > { %v1752_v31 = vsel %vm1046_vm15, 1.0, %v2092_v35 }
 0x232   : > { %v1094_v14 = vadd.f32 %v1752_v31, %v982_v58  ;;  %v1265_v56 = vpop.f32.mrf.mxu0 }
 0x233   : > { %v1299_v21 = vmul.f32 0.125, %v1265_v56  ;;  %v1283_v43 = vpop.f32.mrf.mxu3 }
 0x234   : > { %v1305_v62 = vmul.f32 0.125, %v1283_v43  ;;  %v1206_v46 = vadd.f32 %v1768_v45, %v1094_v14 }
 0x235   : > { %v1319_v61 = vadd.f32 %v2955_v29, %v1299_v21 }
 0x236   : > { %1276 = vmatmul.f32.gmra.mxu0 %v1206_v46  ;;  %v1325_v33 = vadd.f32 %v2955_v29, %v1305_v62  ;;  %v3063_v46 = vld [vmem:[%s3145_s6] ss:$0 sm:$0xff] }
 0x237   : > { %v1335_v35 = vmax.f32 %v1319_v61, 0.0 }
 0x238   : > { %v1341_v20 = vmax.f32 %v1325_v33, 0.0 }
 0x239   : > { %1401 = vmatmul.f32.gmra.mxu1 %v1335_v35 }
 0x23a   : > { %1419 = vmatmul.f32.gmra.mxu3 %v1341_v20 }
 0x253   : > { %v1381_v5 = vpop.f32.mrf.mxu1 }
 0x254   : > { %v1382_v60 = vadd.f32 %v3039_v63, %v1381_v5 }
 0x256   : > { %v1429_v11 = vmax.f32 %v1382_v60, 0.0 }
 0x258   : > { %1481 = vmatmul.f32.vlgmr.msra.gmra.mxu2 %v1429_v11 }
 0x25b   : > { %v1384_v23 = vpop.f32.mrf.mxu1 }
 0x25c   : > { %v1385_v4 = vadd.f32 %v3039_v63, %v1384_v23 }
 0x25e   : > { %v1430_v0 = vmax.f32 %v1385_v4, 0.0 }
 0x25f   : > { %v1268_v36 = vpop.f32.mrf.mxu0 }
 0x260   : > { %v1300_v39 = vmul.f32 0.125, %v1268_v36  ;;  %1484 = vmatmul.f32.gmra.mxu2 %v1430_v0 }
 0x262   : > { %v1320_v2 = vadd.f32 %v2955_v29, %v1300_v39 }
 0x264   : > { %v1387_v48 = vpop.f32.mrf.mxu1  ;;  %v1336_v17 = vmax.f32 %v1320_v2, 0.0 }
 0x265   : > { %v1388_v19 = vadd.f32 %v3039_v63, %v1387_v48 }
 0x266   : > { %1404 = vmatmul.f32.gmra.mxu1 %v1336_v17 }
 0x267   : > { %v1431_v38 = vmax.f32 %v1388_v19, 0.0 }
 0x269   : > { %1487 = vmatmul.f32.gmra.mxu2 %v1431_v38 }
 0x26d   : > { %v1390_v26 = vpop.f32.mrf.mxu1 }
 0x26e   : > { %v1391_v22 = vadd.f32 %v3039_v63, %v1390_v26 }
 0x270   : > { %v1432_v3 = vmax.f32 %v1391_v22, 0.0 }
 0x271   : > { %v1286_v42 = vpop.f32.mrf.mxu3 }
 0x272   : > { %v1306_v44 = vmul.f32 0.125, %v1286_v42  ;;  %1490 = vmatmul.f32.gmra.mxu2 %v1432_v3 }
 0x274   : > { %v1326_v15 = vadd.f32 %v2955_v29, %v1306_v44 }
 0x275   : > { %v1393_v52 = vpop.f32.mrf.mxu1 }
 0x276   : > { %v1394_v1 = vadd.f32 %v3039_v63, %v1393_v52  ;;  %v1271_v10 = vpop.f32.mrf.mxu0  ;;  %v1342_v59 = vmax.f32 %v1326_v15, 0.0 }
 0x277   : > { %v1301_v54 = vmul.f32 0.125, %v1271_v10 }
 0x278   : > { %v1433_v55 = vmax.f32 %v1394_v1, 0.0  ;;  %1422 = vmatmul.f32.gmra.mxu3 %v1342_v59 }
 0x279   : > { %v1321_v30 = vadd.f32 %v2955_v29, %v1301_v54 }
 0x27a   : > { %1493 = vmatmul.f32.gmra.mxu2 %v1433_v55 }
 0x27b   : > { %v1337_v12 = vmax.f32 %v1321_v30, 0.0 }
 0x27d   : > { %v1396_v13 = vpop.f32.mrf.mxu1  ;;  %1407 = vmatmul.f32.gmra.mxu1 %v1337_v12 }
 0x27e   : > { %v1397_v51 = vadd.f32 %v3039_v63, %v1396_v13 }
 0x280   : > { %v1434_v41 = vmax.f32 %v1397_v51, 0.0 }
 0x282   : > { %1496 = vmatmul.f32.gmra.mxu2 %v1434_v41 }
 0x285   : > { %v1399_v47 = vpop.f32.mrf.mxu1 }
 0x286   : > { %v1400_v40 = vadd.f32 %v3039_v63, %v1399_v47 }
 0x287   : > { %v1289_v50 = vpop.f32.mrf.mxu3 }
 0x288   : > { %v1435_v9 = vmax.f32 %v1400_v40, 0.0  ;;  %v1307_v28 = vmul.f32 0.125, %v1289_v50 }
 0x28a   : > { %1499 = vmatmul.f32.gmra.mxu2 %v1435_v9  ;;  %v1327_v6 = vadd.f32 %v2955_v29, %v1307_v28 }
 0x28c   : > { %v1343_v27 = vmax.f32 %v1327_v6, 0.0 }
 0x28e   : > { %1425 = vmatmul.f32.gmra.mxu3 %v1343_v27 }
 0x299   : > { %v1417_v32 = vpop.f32.mrf.mxu3 }
 0x29a   : > { %v1418_v37 = vadd.f32 %v3039_v63, %v1417_v32 }
 0x29c   : > { %v1441_v18 = vmax.f32 %v1418_v37, 0.0 }
 0x29e   : > { %1517 = vmatmul.f32.vlgmr.msra.gmra.mxu3 %v1441_v18 }
 0x2a8   : > { %v1274_v7 = vpop.f32.mrf.mxu0 }
 0x2a9   : > { %v1302_v16 = vmul.f32 0.125, %v1274_v7 }
 0x2ab   : > { %v1322_v25 = vadd.f32 %v2955_v29, %v1302_v16 }
 0x2ad   : > { %v1338_v57 = vmax.f32 %v1322_v25, 0.0 }
 0x2af   : > { %1410 = vmatmul.f32.gmra.mxu1 %v1338_v57 }
 0x2b3   : > { %v1277_v24 = vpop.f32.mrf.mxu0 }
 0x2b4   : > { %v1303_v58 = vmul.f32 0.125, %v1277_v24 }
 0x2b6   : > { %v1323_v49 = vadd.f32 %v2955_v29, %v1303_v58  ;;  %v1402_v31 = vpop.f32.mrf.mxu1 }
 0x2b7   : > { %v1403_v45 = vadd.f32 %v3039_v63, %v1402_v31 }
 0x2b8   : > { %v1339_v14 = vmax.f32 %v1323_v49, 0.0 }
 0x2b9   : > { %v1436_v56 = vmax.f32 %v1403_v45, 0.0 }
 0x2ba   : > { %1413 = vmatmul.f32.gmra.mxu1 %v1339_v14 }
 0x2bb   : > { %1502 = vmatmul.f32.gmra.mxu2 %v1436_v56 }
 0x2bd   : > { %v1420_v21 = vpop.f32.mrf.mxu3 }
 0x2be   : > { %v1421_v43 = vadd.f32 %v3039_v63, %v1420_v21 }
 0x2c0   : > { %v1442_v62 = vmax.f32 %v1421_v43, 0.0 }
 0x2c2   : > { %1520 = vmatmul.f32.gmra.mxu3 %v1442_v62 }
 0x2db   : > { %v1482_v29 = vpop.f32.mrf.mxu2 }
 0x2dc   : > { %v1483_v34 = vadd.f32 %v3063_v46, %v1482_v29 }
 0x2de   : > { %1530 = vst [vmem:[%s3066_s16] sm:$0xff] %v1483_v34 }
 0x2e3   : > { %v1405_v61 = vpop.f32.mrf.mxu1  ;;  %v1485_v33 = vpop.f32.mrf.mxu2 }
 0x2e4   : > { %v1406_v8 = vadd.f32 %v3039_v63, %v1405_v61  ;;  %v1486_v53 = vadd.f32 %v3063_v46, %v1485_v33 }
 0x2e6   : > { %v1437_v35 = vmax.f32 %v1406_v8, 0.0  ;;  %1531 = vst [vmem:[%s3066_s16 + $0x8] sm:$0xff] %v1486_v53 }
 0x2e8   : > { %1505 = vmatmul.f32.gmra.mxu2 %v1437_v35 }
 0x2ec   : > { %v1488_v20 = vpop.f32.mrf.mxu2 }
 0x2ed   : > { %v1489_v5 = vadd.f32 %v3063_v46, %v1488_v20 }
 0x2ef   : > { %1532 = vst [vmem:[%s3066_s16 + $0x10] sm:$0xff] %v1489_v5 }
 0x2f5   : > { %v1491_v60 = vpop.f32.mrf.mxu2 }
 0x2f6   : > { %v1492_v11 = vadd.f32 %v3063_v46, %v1491_v60 }
 0x2f8   : > { %1533 = vst [vmem:[%s3066_s16 + $0x18] sm:$0xff] %v1492_v11 }
 0x2fa   : > { %v1408_v23 = vpop.f32.mrf.mxu1 }
 0x2fb   : > { %v1409_v4 = vadd.f32 %v3039_v63, %v1408_v23  ;;  %v1423_v0 = vpop.f32.mrf.mxu3 }
 0x2fc   : > { %v1424_v36 = vadd.f32 %v3039_v63, %v1423_v0 }
 0x2fd   : > { %v1438_v39 = vmax.f32 %v1409_v4, 0.0  ;;  %v1494_v2 = vpop.f32.mrf.mxu2 }
 0x2fe   : > { %v1443_v48 = vmax.f32 %v1424_v36, 0.0  ;;  %v1495_v17 = vadd.f32 %v3063_v46, %v1494_v2 }
 0x2ff   : > { %1508 = vmatmul.f32.gmra.mxu2 %v1438_v39 }
 0x300   : > { %1534 = vst [vmem:[%s3066_s16 + $0x20] sm:$0xff] %v1495_v17  ;;  %1523 = vmatmul.f32.gmra.mxu3 %v1443_v48 }
 0x305   : > { %v1497_v19 = vpop.f32.mrf.mxu2 }
 0x306   : > { %v1498_v38 = vadd.f32 %v3063_v46, %v1497_v19 }
 0x308   : > { %1535 = vst [vmem:[%s3066_s16 + $0x28] sm:$0xff] %v1498_v38 }
 0x30d   : > { %v1500_v26 = vpop.f32.mrf.mxu2 }
 0x30e   : > { %v1501_v22 = vadd.f32 %v3063_v46, %v1500_v26 }
 0x310   : > { %1536 = vst [vmem:[%s3066_s16 + $0x30] sm:$0xff] %v1501_v22 }
 0x311   : > { %v1426_v3 = vpop.f32.mrf.mxu3 }
 0x312   : > { %v1427_v42 = vadd.f32 %v3039_v63, %v1426_v3 }
 0x314   : > { %v1444_v44 = vmax.f32 %v1427_v42, 0.0 }
 0x316   : > { %1526 = vmatmul.f32.gmra.mxu3 %v1444_v44 }
 0x321   : > { %v1518_v15 = vpop.f32.mrf.mxu3 }
 0x322   : > { %v1519_v52 = vadd.f32 %v3063_v46, %v1518_v15 }
 0x324   : > { %1542 = vst [vmem:[%s3066_s16 + $0x60] sm:$0xff] %v1519_v52 }
 0x32c   : > { %v1411_v1 = vpop.f32.mrf.mxu1 }
 0x32d   : > { %v1412_v10 = vadd.f32 %v3039_v63, %v1411_v1 }
 0x32f   : > { %v1439_v59 = vmax.f32 %v1412_v10, 0.0 }
 0x331   : > { %1511 = vmatmul.f32.gmra.mxu2 %v1439_v59 }
 0x337   : > { %v1414_v54 = vpop.f32.mrf.mxu1 }
 0x338   : > { %v1415_v55 = vadd.f32 %v3039_v63, %v1414_v54 }
 0x33a   : > { %v1440_v30 = vmax.f32 %v1415_v55, 0.0 }
 0x33c   : > { %1514 = vmatmul.f32.gmra.mxu2 %v1440_v30 }
 0x33e   : > { %v1503_v12 = vpop.f32.mrf.mxu2 }
 0x33f   : > { %v1504_v13 = vadd.f32 %v3063_v46, %v1503_v12 }
 0x341   : > { %1537 = vst [vmem:[%s3066_s16 + $0x38] sm:$0xff] %v1504_v13 }
 0x345   : > { %v1521_v51 = vpop.f32.mrf.mxu3 }
 0x346   : > { %v1522_v41 = vadd.f32 %v3063_v46, %v1521_v51 }
 0x348   : > { %1543 = vst [vmem:[%s3066_s16 + $0x68] sm:$0xff] %v1522_v41 }
 0x36b   : > { %v1506_v47 = vpop.f32.mrf.mxu2 }
 0x36c   : > { %v1507_v40 = vadd.f32 %v3063_v46, %v1506_v47 }
 0x36e   : > { %1538 = vst [vmem:[%s3066_s16 + $0x40] sm:$0xff] %v1507_v40 }
 0x382   : > { %v1509_v63 = vpop.f32.mrf.mxu2 }
 0x383   : > { %v1510_v50 = vadd.f32 %v3063_v46, %v1509_v63  ;;  %v1524_v9 = vpop.f32.mrf.mxu3 }
 0x384   : > { %v1525_v28 = vadd.f32 %v3063_v46, %v1524_v9 }
 0x385   : > { %1539 = vst [vmem:[%s3066_s16 + $0x48] sm:$0xff] %v1510_v50 }
 0x386   : > { %1544 = vst [vmem:[%s3066_s16 + $0x70] sm:$0xff] %v1525_v28 }
 0x399   : > { %v1527_v6 = vpop.f32.mrf.mxu3 }
 0x39a   : > { %v1528_v27 = vadd.f32 %v3063_v46, %v1527_v6 }
 0x39c   : > { %1545 = vst [vmem:[%s3066_s16 + $0x78] sm:$0xff] %v1528_v27 }
 0x3b4   : > { %v1512_v32 = vpop.f32.mrf.mxu2 }
 0x3b5   : > { %v1513_v37 = vadd.f32 %v3063_v46, %v1512_v32 }
 0x3b7   : > { %1540 = vst [vmem:[%s3066_s16 + $0x50] sm:$0xff] %v1513_v37 }
 0x3bf   : > { %v1515_v18 = vpop.f32.mrf.mxu2 }
 0x3c0   : > { %v1516_v7 = vadd.f32 %v3063_v46, %v1515_v18 }
 0x3c2   : > { %1541 = vst [vmem:[%s3066_s16 + $0x58] sm:$0xff] %v1516_v7 }
 0x3c3   : > { %2041 = shalt.err (!%p2038_p8)
}
 0x3c4   : > { %s2094_s29 = smov 128   ;;  %s2095_s16 = smov 8  }
 0x3c5   : > { %1831 = dma.vmem_to_hbm [thread:$0]  (%p2174_p5), %s1560_s21, 2048, %s1562_s22, %s1547_s23, %s2094_s29, %s2094_s29, %s2095_s16  }
 0x3c6 PF: > { %p1843_p9 = scmp.ge.s32.totalorder %s2080_s27, 2  ;;  %s1576_s18 = sand.u32 1, %s2068_s24  }
 0x3c7   : > { %s1577_s19 = scalar_lea.sflag [#allocation4], %s1576_s18 }
 0x3c8   : > { %p1838_p10 = pnand %p1843_p9, %p2178_p6 }
 0x3ca   : > { %p1839_p11 = pneg %p1838_p10 }
 0x3cc   : > { %2063 = dma.done.wait (%p1839_p11), %s1577_s19, 2048  }
 0x3cd   : > { %2065 = vsyncadd (%p1839_p11), %s1577_s19, 4294965248  ;;  %p18_p12 = scmp.ge.s32.totalorder %s2161_s30, 4   ;;  %s3149_s24 = smov %s2072_s25 }
 0x3ce   : > { %s3150_s25 = smov %s2076_s26  ;;  %s3151_s26 = smov %s2172_s10 }
 0x3cf   : > { %s3152_s27 = smov %s2161_s30  ;;  %20 = sbr.rel (!%p18_p12) target bundleno = 4 (0x4), region = 88 }
 0x3d4   :  { %1583 = vsyncpa [#allocation3], 1 }
 0x3d5   :  { %1585 = vsyncpa [#allocation3 + $0x1], 1 }
 0x3d6   :  { %1586 = vsyncpa [#allocation4], 1 }
 0x3d7   :  { %1588 = vsyncpa [#allocation4 + $0x1], 1 }

</bundles_post_ra>
